<compile_context>
chip_gen: v5e
topology: v5e:2x2
jax: 0.10.0
libtpu: 0.0.40
codegen_flags: <defaults>
</compile_context>

<pallas_src>
import math

import jax
import jax.numpy as jnp
from jax.experimental import pallas as pl
from jax.experimental.pallas import tpu as pltpu

# ---- synthetic "roberta-base"-like config at small shapes --------------------
VOCAB      = 100
HIDDEN     = 32
NUM_HEADS  = 4
HEAD_DIM   = HIDDEN // NUM_HEADS
FFN        = 64
NUM_LAYERS = 2
MAX_POS    = 64
LN_EPS     = 1e-5
PAD_IDX    = 1          # RoBERTa padding_idx

# lane-padded sizes (multiples of 128 on the lane axis)
HID_PAD  = 128
FFN_PAD  = 128
HEAD_PAD = HID_PAD // NUM_HEADS        # 32 (true head_dim 8, zero-padded)


# ---- the fused per-(batch-element, layer) kernel --------------------------------
def mdetr_layer_kernel(emb_ref, bias_ref, eg_ref, eb_ref,
                       wqkvT_ref, bqkvT_ref, wo3_ref, bo_ref,
                       l1g_ref, l1b_ref, w1_ref, b1_ref,
                       w2_ref, b2_ref, l2g_ref, l2b_ref,
                       o_ref, x_sc):
    l = pl.program_id(1)                      # layer index (inner, "arbitrary")
    _, S, HP = emb_ref.shape                  # block = one batch element
    NH = NUM_HEADS
    HD = HP // NH

    # LayerNorm statistics are masked to the TRUE hidden size (padded lanes are 0).
    lane = jax.lax.broadcasted_iota(jnp.int32, (1, HP), 1)
    h_mask = (lane < HIDDEN).astype(jnp.float32)
    inv_h = 1.0 / HIDDEN

    def ln(v, g, b):
        mu = jnp.sum(v, axis=-1, keepdims=True) * inv_h
        d = (v - mu) * h_mask
        var = jnp.sum(d * d, axis=-1, keepdims=True) * inv_h
        return d * jax.lax.rsqrt(var + LN_EPS) * g + b

    # ---- layer 0 of this batch element: embedding LayerNorm into the
    #      persistent f32 residual-stream scratch -----------------------------
    @pl.when(l == 0)
    def _():
        x_sc[...] = ln(emb_ref[...].reshape(S, HP), eg_ref[...], eb_ref[...])

    x = x_sc[...]                             # (S, HP) f32 residual stream
    x_bf = x.astype(jnp.bfloat16)             # single bf16 cast of the slab

    # ---- fused QKV projection, produced channel-major: (3*HP, S) ------------
    # qkvT[j, s] = sum_c Wqkv[c, j] * x[s, c]  (rhs contracted on its last axis;
    # no transpose of the activation slab needed).
    qkvT = jnp.einsum('jc,sc->js', wqkvT_ref[0], x_bf,
                      preferred_element_type=jnp.float32) + bqkvT_ref[0]

    # ---- split heads with row-only reshapes (no lane shuffles) --------------
    qT = qkvT[0:HP].reshape(NH, HD, S)               # (NH, HD, S)
    kT = qkvT[HP:2 * HP].reshape(NH, HD, S)
    vT = qkvT[2 * HP:].reshape(NH, HD, S)
    # only transpose in the kernel: minor-dims swap (supported XLU path), in f32
    qh = jnp.swapaxes(qT, 1, 2).astype(jnp.bfloat16)  # (NH, S, HD)

    # ---- ONE head-batched attention per layer --------------------------------
    # (1/sqrt(head_dim) is pre-folded into the Q projection weights.)
    s = jnp.einsum('hqd,hdk->hqk', qh, kT.astype(jnp.bfloat16),
                   preferred_element_type=jnp.float32)        # (NH, S, S)
    s = s + bias_ref[...].reshape(1, 1, S)    # mask bias added once per layer
    s = s - jnp.max(s, axis=-1, keepdims=True)
    p = jnp.exp(s)
    # approx reciprocal -> EUP slot; set approx=False for strict parity tests
    p = p * pl.reciprocal(jnp.sum(p, axis=-1, keepdims=True), approx=True)
    ctx = jnp.einsum('hqk,hdk->hqd', p.astype(jnp.bfloat16),
                     vT.astype(jnp.bfloat16),
                     preferred_element_type=jnp.float32)      # (NH, S, HD)

    # ---- output projection: head-batched matmul + sum over heads -------------
    attn = jnp.sum(
        jnp.einsum('hqd,hdj->hqj', ctx.astype(jnp.bfloat16), wo3_ref[0],
                   preferred_element_type=jnp.float32),
        axis=0) + bo_ref[0]                                    # (S, HP)

    h1 = ln(x + attn, l1g_ref[0], l1b_ref[0])

    # ---- feed-forward ---------------------------------------------------------
    ff = jnp.dot(h1.astype(jnp.bfloat16), w1_ref[0],
                 preferred_element_type=jnp.float32) + b1_ref[0]
    # TODO(synk): RoBERTa uses exact erf-GELU; tanh approximation for robust TPU lowering.
    ff = jax.nn.gelu(ff, approximate=True)
    ff = jnp.dot(ff.astype(jnp.bfloat16), w2_ref[0],
                 preferred_element_type=jnp.float32) + b2_ref[0]
    x_new = ln(h1 + ff, l2g_ref[0], l2b_ref[0])
    x_sc[...] = x_new

    # ---- last layer: unmasked mean over the sequence (matches torch.mean) ----
    @pl.when(l == pl.num_programs(1) - 1)
    def _():
        o_ref[...] = jnp.mean(x_new, axis=0, keepdims=True).reshape(1, 1, HP)


def mdetr_encoder_call(emb, attn_bias, pk):
    """emb: (B, S, HID_PAD) f32, attn_bias: (B, 1, S) f32 -> (B, 1, HID_PAD) f32."""
    B, S, HP = emb.shape
    grid = (B, NUM_LAYERS)   # batch "parallel" (megacore), layers "arbitrary" (streamed)

    def wmap(shape):
        return pl.BlockSpec((1,) + shape, lambda b, l, s=len(shape): (l,) + (0,) * s)

    in_specs = [
        pl.BlockSpec((1, S, HP), lambda b, l: (b, 0, 0)),   # embeddings
        pl.BlockSpec((1, 1, S), lambda b, l: (b, 0, 0)),    # additive key mask
        pl.BlockSpec((1, HP), lambda b, l: (0, 0)),         # emb LN gamma
        pl.BlockSpec((1, HP), lambda b, l: (0, 0)),         # emb LN beta
        wmap((3 * HP, HP)),                                 # WqkvT   (bf16)
        wmap((3 * HP, 1)),                                  # bqkvT
        wmap((NUM_HEADS, HEAD_PAD, HP)),                    # Wo (per-head, bf16)
        wmap((1, HP)),                                      # bo
        wmap((1, HP)),                                      # ln1 gamma
        wmap((1, HP)),                                      # ln1 beta
        wmap((HP, FFN_PAD)),                                # W1 (bf16)
        wmap((1, FFN_PAD)),                                 # b1
        wmap((FFN_PAD, HP)),                                # W2 (bf16)
        wmap((1, HP)),                                      # b2
        wmap((1, HP)),                                      # ln2 gamma
        wmap((1, HP)),                                      # ln2 beta
    ]
    out_spec = pl.BlockSpec((1, 1, HP), lambda b, l: (b, 0, 0))

    return pl.pallas_call(
        mdetr_layer_kernel,
        grid_spec=pltpu.PrefetchScalarGridSpec(
            num_scalar_prefetch=0,
            grid=grid,
            in_specs=in_specs,
            out_specs=out_spec,
            scratch_shapes=[pltpu.VMEM((S, HP), jnp.float32)],   # residual stream
        ),
        out_shape=jax.ShapeDtypeStruct((B, 1, HP), jnp.float32),
        compiler_params=pltpu.CompilerParams(
            dimension_semantics=("parallel", "arbitrary"),
            vmem_limit_bytes=32 * 1024 * 1024,
        ),
    )(emb, attn_bias, pk['emb_ln_g'], pk['emb_ln_b'],
      pk['wqkvT'], pk['bqkvT'], pk['wo3'], pk['bo'],
      pk['ln1_g'], pk['ln1_b'], pk['w1'], pk['b1'],
      pk['w2'], pk['b2'], pk['ln2_g'], pk['ln2_b'])


# ---- deterministic synthetic parameters (stand-in for the MDETR checkpoint) -----
def init_params(key):
    std = 0.02
    keys = jax.random.split(key, 3 + NUM_LAYERS)
    params = {
        'word_emb': jax.random.normal(keys[0], (VOCAB, HIDDEN), jnp.float32) * std,
        'pos_emb':  jax.random.normal(keys[1], (MAX_POS, HIDDEN), jnp.float32) * std,
        'type_emb': jax.random.normal(keys[2], (1, HIDDEN), jnp.float32) * std,
        'emb_ln_g': jnp.ones((1, HIDDEN), jnp.float32),
        'emb_ln_b': jnp.zeros((1, HIDDEN), jnp.float32),
        'layers': [],
    }
    for l in range(NUM_LAYERS):
        lk = jax.random.split(keys[3 + l], 6)
        params['layers'].append(dict(
            wq=jax.random.normal(lk[0], (HIDDEN, HIDDEN), jnp.float32) * std,
            bq=jnp.zeros((1, HIDDEN), jnp.float32),
            wk=jax.random.normal(lk[1], (HIDDEN, HIDDEN), jnp.float32) * std,
            bk=jnp.zeros((1, HIDDEN), jnp.float32),
            wv=jax.random.normal(lk[2], (HIDDEN, HIDDEN), jnp.float32) * std,
            bv=jnp.zeros((1, HIDDEN), jnp.float32),
            wo=jax.random.normal(lk[3], (HIDDEN, HIDDEN), jnp.float32) * std,
            bo=jnp.zeros((1, HIDDEN), jnp.float32),
            ln1_g=jnp.ones((1, HIDDEN), jnp.float32),
            ln1_b=jnp.zeros((1, HIDDEN), jnp.float32),
            w1=jax.random.normal(lk[4], (HIDDEN, FFN), jnp.float32) * std,
            b1=jnp.zeros((1, FFN), jnp.float32),
            w2=jax.random.normal(lk[5], (FFN, HIDDEN), jnp.float32) * std,
            b2=jnp.zeros((1, HIDDEN), jnp.float32),
            ln2_g=jnp.ones((1, HIDDEN), jnp.float32),
            ln2_b=jnp.zeros((1, HIDDEN), jnp.float32),
        ))
    return params


def prepare_params(params):
    """One-time packing: pad lane dims to 128-multiples (per-head padding so q/k/v
    heads sit on 32-lane blocks), fuse QKV into one channel-major (3*HP, HP)
    projection, fold 1/sqrt(head_dim) into Q, stack per-layer weights along L,
    and cast matmul weights to bf16 (f32 accumulation in-kernel)."""
    scale = 1.0 / math.sqrt(HEAD_DIM)

    def pad2(w, r, c):
        return jnp.pad(w, ((0, r - w.shape[0]), (0, c - w.shape[1])))

    def pad_head_cols(w):          # (H, H) -> (HP, HP), output channels per-head padded
        w = w.reshape(HIDDEN, NUM_HEADS, HEAD_DIM)
        w = jnp.pad(w, ((0, HID_PAD - HIDDEN), (0, 0), (0, HEAD_PAD - HEAD_DIM)))
        return w.reshape(HID_PAD, HID_PAD)

    def pad_head_bias(b):          # (1, H) -> (1, HP)
        b = b.reshape(NUM_HEADS, HEAD_DIM)
        b = jnp.pad(b, ((0, 0), (0, HEAD_PAD - HEAD_DIM)))
        return b.reshape(1, HID_PAD)

    def pad_head_rows(w):          # wo: (H, H) -> (NH, HD_PAD, HP), input rows per-head padded
        w = w.reshape(NUM_HEADS, HEAD_DIM, HIDDEN)
        return jnp.pad(w, ((0, 0), (0, HEAD_PAD - HEAD_DIM), (0, HID_PAD - HIDDEN)))

    wqkvT, bqkvT, wo3, bo = [], [], [], []
    ln1_g, ln1_b, w1, b1, w2, b2, ln2_g, ln2_b = [], [], [], [], [], [], [], []
    for lp in params['layers']:
        wq_p = pad_head_cols(lp['wq'] * scale)
        wk_p = pad_head_cols(lp['wk'])
        wv_p = pad_head_cols(lp['wv'])
        wqkvT.append(jnp.concatenate([wq_p, wk_p, wv_p], axis=1).T)      # (3HP, HP)
        bq_p = pad_head_bias(lp['bq'] * scale)
        bk_p = pad_head_bias(lp['bk'])
        bv_p = pad_head_bias(lp['bv'])
        bqkvT.append(jnp.concatenate([bq_p, bk_p, bv_p], axis=1).T)      # (3HP, 1)
        wo3.append(pad_head_rows(lp['wo']))                              # (NH, HD, HP)
        bo.append(pad2(lp['bo'], 1, HID_PAD))
        ln1_g.append(pad2(lp['ln1_g'], 1, HID_PAD))
        ln1_b.append(pad2(lp['ln1_b'], 1, HID_PAD))
        w1.append(pad2(lp['w1'], HID_PAD, FFN_PAD))
        b1.append(pad2(lp['b1'], 1, FFN_PAD))
        w2.append(pad2(lp['w2'], FFN_PAD, HID_PAD))
        b2.append(pad2(lp['b2'], 1, HID_PAD))
        ln2_g.append(pad2(lp['ln2_g'], 1, HID_PAD))
        ln2_b.append(pad2(lp['ln2_b'], 1, HID_PAD))

    stack = lambda xs: jnp.stack(xs, axis=0)
    return dict(
        word_emb=pad2(params['word_emb'], VOCAB, HID_PAD),
        pos_emb=pad2(params['pos_emb'], MAX_POS, HID_PAD),
        type_emb=pad2(params['type_emb'], 1, HID_PAD),
        emb_ln_g=pad2(params['emb_ln_g'], 1, HID_PAD),
        emb_ln_b=pad2(params['emb_ln_b'], 1, HID_PAD),
        wqkvT=stack(wqkvT).astype(jnp.bfloat16),
        bqkvT=stack(bqkvT),
        wo3=stack(wo3).astype(jnp.bfloat16),
        bo=stack(bo),
        ln1_g=stack(ln1_g), ln1_b=stack(ln1_b),
        w1=stack(w1).astype(jnp.bfloat16), b1=stack(b1),
        w2=stack(w2).astype(jnp.bfloat16), b2=stack(b2),
        ln2_g=stack(ln2_g), ln2_b=stack(ln2_b),
    )


# ---- forward: token ids -> (B, 1, H), matching Mdetr.forward semantics ----------
def mdetr_forward(packed, input_ids):
    B, S = input_ids.shape
    # HF attention_mask: 1 for real tokens, 0 for padding (token id == PAD_IDX)
    mask = (input_ids != PAD_IDX).astype(jnp.float32)                 # (B, S)
    # RoBERTa position ids: cumulative count of non-pad tokens + padding_idx
    pos_ids = (jnp.cumsum(mask, axis=1) * mask).astype(jnp.int32) + PAD_IDX
    # TODO(synk): RobertaTokenizerFast (string -> ids) has no Pallas equivalent.
    word = packed['word_emb'][input_ids]                              # glue gathers (XLA)
    pos = packed['pos_emb'][pos_ids]
    tok = packed['type_emb'][0][None, None, :]
    emb = (word + pos + tok).astype(jnp.float32)                      # (B, S, HID_PAD)

    attn_bias = ((1.0 - mask) * -1e9)[:, None, :]                     # (B, 1, S)

    pooled = mdetr_encoder_call(emb, attn_bias, packed)               # (B, 1, HID_PAD)
    # last_hidden_state.transpose(0,1) -> mean(0) -> unsqueeze(1)  ==  (B, 1, H)
    return pooled[:, :, :HIDDEN]


if __name__ == "__main__":
    key = jax.random.PRNGKey(0)
    k_ids, k_params = jax.random.split(key)

    B, S = 2, 8
    input_ids = jax.random.randint(k_ids, (B, S), 0, VOCAB, dtype=jnp.int32)
    params = init_params(k_params)
    packed = prepare_params(params)      # one-time weight packing (not per call)

    out = mdetr_forward(packed, input_ids)
    out = jax.block_until_ready(out)
    assert out.shape == (B, 1, HIDDEN), out.shape
    assert out.dtype == jnp.float32
    print("KERNEL_OK")
</pallas_src>

<mosaic_0001>
module attributes {stable_mosaic.version = 11 : i64} {
  func.func @mdetr_layer_kernel(%arg0: i32, %arg1: i32, %arg2: memref<1x8x128xf32, #tpu.memory_space<vmem>>, %arg3: memref<1x1x8xf32, #tpu.memory_space<vmem>>, %arg4: memref<1x128xf32, #tpu.memory_space<vmem>>, %arg5: memref<1x128xf32, #tpu.memory_space<vmem>>, %arg6: memref<1x384x128xbf16, #tpu.memory_space<vmem>>, %arg7: memref<1x384x1xf32, #tpu.memory_space<vmem>>, %arg8: memref<1x4x32x128xbf16, #tpu.memory_space<vmem>>, %arg9: memref<1x1x128xf32, #tpu.memory_space<vmem>>, %arg10: memref<1x1x128xf32, #tpu.memory_space<vmem>>, %arg11: memref<1x1x128xf32, #tpu.memory_space<vmem>>, %arg12: memref<1x128x128xbf16, #tpu.memory_space<vmem>>, %arg13: memref<1x1x128xf32, #tpu.memory_space<vmem>>, %arg14: memref<1x128x128xbf16, #tpu.memory_space<vmem>>, %arg15: memref<1x1x128xf32, #tpu.memory_space<vmem>>, %arg16: memref<1x1x128xf32, #tpu.memory_space<vmem>>, %arg17: memref<1x1x128xf32, #tpu.memory_space<vmem>>, %arg18: memref<1x1x128xf32, #tpu.memory_space<vmem>>, %arg19: memref<8x128xf32, #tpu.memory_space<vmem>>) attributes {dimension_semantics = [#tpu.dimension_semantics<parallel>, #tpu.dimension_semantics<arbitrary>], iteration_bounds = array<i64: 2, 2>, scalar_prefetch = 0 : i64, scratch_operands = 1 : i64, tpu.core_type = #tpu.core_type<tc>, window_params = [{transform_indices = @transform_0, window_bounds = array<i64: 1, 8, 128>}, {transform_indices = @transform_1, window_bounds = array<i64: 1, 1, 8>}, {pipeline_mode = #tpu.pipeline_mode<synchronous>, transform_indices = @transform_2, window_bounds = array<i64: 1, 128>}, {pipeline_mode = #tpu.pipeline_mode<synchronous>, transform_indices = @transform_3, window_bounds = array<i64: 1, 128>}, {transform_indices = @transform_4, window_bounds = array<i64: 1, 384, 128>}, {transform_indices = @transform_5, window_bounds = array<i64: 1, 384, 1>}, {transform_indices = @transform_6, window_bounds = array<i64: 1, 4, 32, 128>}, {transform_indices = @transform_7, window_bounds = array<i64: 1, 1, 128>}, {transform_indices = @transform_8, window_bounds = array<i64: 1, 1, 128>}, {transform_indices = @transform_9, window_bounds = array<i64: 1, 1, 128>}, {transform_indices = @transform_10, window_bounds = array<i64: 1, 128, 128>}, {transform_indices = @transform_11, window_bounds = array<i64: 1, 1, 128>}, {transform_indices = @transform_12, window_bounds = array<i64: 1, 128, 128>}, {transform_indices = @transform_13, window_bounds = array<i64: 1, 1, 128>}, {transform_indices = @transform_14, window_bounds = array<i64: 1, 1, 128>}, {transform_indices = @transform_15, window_bounds = array<i64: 1, 1, 128>}, {transform_indices = @transform_16, window_bounds = array<i64: 1, 1, 128>}]} {
    %0 = tpu.iota {dimensions = array<i32: 1>} : vector<1x128xi32>
    %c32_i32 = arith.constant 32 : i32
    %1 = vector.broadcast %c32_i32 : i32 to vector<1x128xi32>
    %2 = arith.cmpi slt, %0, %1 : vector<1x128xi32>
    %3 = arith.extui %2 : vector<1x128xi1> to vector<1x128xi32>
    %4 = arith.sitofp %3 : vector<1x128xi32> to vector<1x128xf32>
    %c0_i32 = arith.constant 0 : i32
    %5 = arith.cmpi eq, %arg1, %c0_i32 : i32
    %6 = arith.extui %5 : i1 to i32
    %c0_i32_0 = arith.constant 0 : i32
    %7 = arith.cmpi ne, %6, %c0_i32_0 : i32
    scf.if %7 {
      %c0_67 = arith.constant 0 : index
      %c0_68 = arith.constant 0 : index
      %c0_69 = arith.constant 0 : index
      %139 = vector.load %arg2[%c0_67, %c0_68, %c0_69] : memref<1x8x128xf32, #tpu.memory_space<vmem>>, vector<1x8x128xf32>
      %140 = vector.shape_cast %139 : vector<1x8x128xf32> to vector<8x128xf32>
      %c0_70 = arith.constant 0 : index
      %c0_71 = arith.constant 0 : index
      %141 = vector.load %arg4[%c0_70, %c0_71] : memref<1x128xf32, #tpu.memory_space<vmem>>, vector<1x128xf32>
      %c0_72 = arith.constant 0 : index
      %c0_73 = arith.constant 0 : index
      %142 = vector.load %arg5[%c0_72, %c0_73] : memref<1x128xf32, #tpu.memory_space<vmem>>, vector<1x128xf32>
      %cst_74 = arith.constant dense<0.000000e+00> : vector<8xf32>
      %143 = vector.multi_reduction <add>, %140, %cst_74 [1] : vector<8x128xf32> to vector<8xf32>
      %144 = vector.shape_cast %143 : vector<8xf32> to vector<8x1xf32>
      %cst_75 = arith.constant 3.125000e-02 : f32
      %145 = vector.broadcast %cst_75 : f32 to vector<8x1xf32>
      %146 = arith.mulf %144, %145 : vector<8x1xf32>
      %147 = vector.broadcast %146 : vector<8x1xf32> to vector<8x128xf32>
      %148 = arith.subf %140, %147 : vector<8x128xf32>
      %149 = vector.broadcast %4 : vector<1x128xf32> to vector<8x128xf32>
      %150 = arith.mulf %148, %149 : vector<8x128xf32>
      %151 = arith.mulf %150, %150 : vector<8x128xf32>
      %cst_76 = arith.constant dense<0.000000e+00> : vector<8xf32>
      %152 = vector.multi_reduction <add>, %151, %cst_76 [1] : vector<8x128xf32> to vector<8xf32>
      %153 = vector.shape_cast %152 : vector<8xf32> to vector<8x1xf32>
      %cst_77 = arith.constant 3.125000e-02 : f32
      %154 = vector.broadcast %cst_77 : f32 to vector<8x1xf32>
      %155 = arith.mulf %153, %154 : vector<8x1xf32>
      %cst_78 = arith.constant 9.99999974E-6 : f32
      %156 = vector.broadcast %cst_78 : f32 to vector<8x1xf32>
      %157 = arith.addf %155, %156 : vector<8x1xf32>
      %158 = math.rsqrt %157 : vector<8x1xf32>
      %159 = vector.broadcast %158 : vector<8x1xf32> to vector<8x128xf32>
      %160 = arith.mulf %150, %159 : vector<8x128xf32>
      %161 = vector.broadcast %141 : vector<1x128xf32> to vector<8x128xf32>
      %162 = arith.mulf %160, %161 : vector<8x128xf32>
      %163 = vector.broadcast %142 : vector<1x128xf32> to vector<8x128xf32>
      %164 = arith.addf %162, %163 : vector<8x128xf32>
      %c0_79 = arith.constant 0 : index
      %c0_80 = arith.constant 0 : index
      %165 = vector.load %arg19[%c0_79, %c0_80] : memref<8x128xf32, #tpu.memory_space<vmem>>, vector<8x128xf32>
      tpu.vector_store %arg19[%c0_79, %c0_80], %164 {strides = array<i32>} : memref<8x128xf32, #tpu.memory_space<vmem>>, vector<8x128xf32>,
    } else {
    }
    %c0 = arith.constant 0 : index
    %c0_1 = arith.constant 0 : index
    %8 = vector.load %arg19[%c0, %c0_1] : memref<8x128xf32, #tpu.memory_space<vmem>>, vector<8x128xf32>
    %9 = arith.truncf %8 : vector<8x128xf32> to vector<8x128xbf16>
    %c0_2 = arith.constant 0 : index
    %c0_3 = arith.constant 0 : index
    %c0_4 = arith.constant 0 : index
    %10 = vector.load %arg6[%c0_2, %c0_3, %c0_4] : memref<1x384x128xbf16, #tpu.memory_space<vmem>>, vector<1x384x128xbf16>
    %11 = vector.shape_cast %10 : vector<1x384x128xbf16> to vector<384x128xbf16>
    "tpu.trace_start"() <{level = 10 : i32, message = "jc,sc->js"}> : () -> ()
    %cst = arith.constant dense<0.000000e+00> : vector<384x8xf32>
    %12 = tpu.matmul %11, %9, %cst {dimension_numbers = #tpu.dot_dimension_numbers<[1], [1], [0], [0], [0, 0, 1, 0], [], []>} : vector<384x128xbf16>, vector<8x128xbf16>, vector<384x8xf32> -> vector<384x8xf32>
    "tpu.trace_stop"() : () -> ()
    %c0_5 = arith.constant 0 : index
    %c0_6 = arith.constant 0 : index
    %c0_7 = arith.constant 0 : index
    %13 = vector.load %arg7[%c0_5, %c0_6, %c0_7] : memref<1x384x1xf32, #tpu.memory_space<vmem>>, vector<1x384x1xf32>
    %14 = vector.shape_cast %13 : vector<1x384x1xf32> to vector<384x1xf32>
    %15 = vector.broadcast %14 : vector<384x1xf32> to vector<384x8xf32>
    %16 = arith.addf %12, %15 : vector<384x8xf32>
    %17 = vector.extract_strided_slice %16 {offsets = [0, 0], sizes = [128, 8], strides = [1, 1]} : vector<384x8xf32> to vector<128x8xf32>
    %18 = vector.shape_cast %17 : vector<128x8xf32> to vector<4x32x8xf32>
    %19 = vector.extract_strided_slice %16 {offsets = [128, 0], sizes = [128, 8], strides = [1, 1]} : vector<384x8xf32> to vector<128x8xf32>
    %20 = vector.shape_cast %19 : vector<128x8xf32> to vector<4x32x8xf32>
    %21 = vector.extract_strided_slice %16 {offsets = [256, 0], sizes = [128, 8], strides = [1, 1]} : vector<384x8xf32> to vector<128x8xf32>
    %22 = vector.shape_cast %21 : vector<128x8xf32> to vector<4x32x8xf32>
    %23 = tpu.transpose %18, [0, 2, 1] : vector<4x32x8xf32> -> vector<4x8x32xf32>
    %24 = arith.truncf %23 : vector<4x8x32xf32> to vector<4x8x32xbf16>
    %25 = arith.truncf %20 : vector<4x32x8xf32> to vector<4x32x8xbf16>
    "tpu.trace_start"() <{level = 10 : i32, message = "hqd,hdk->hqk"}> : () -> ()
    %cst_8 = arith.constant dense<0.000000e+00> : vector<4x8x8xf32>
    %26 = tpu.matmul %24, %25, %cst_8 {dimension_numbers = #tpu.dot_dimension_numbers<[2], [1], [1], [2], [0, 0, 0, 1, 1, 2], [0], [0]>} : vector<4x8x32xbf16>, vector<4x32x8xbf16>, vector<4x8x8xf32> -> vector<4x8x8xf32>
    "tpu.trace_stop"() : () -> ()
    %c0_9 = arith.constant 0 : index
    %c0_10 = arith.constant 0 : index
    %c0_11 = arith.constant 0 : index
    %27 = vector.load %arg3[%c0_9, %c0_10, %c0_11] : memref<1x1x8xf32, #tpu.memory_space<vmem>>, vector<1x1x8xf32>
    %28 = vector.broadcast %27 : vector<1x1x8xf32> to vector<4x8x8xf32>
    %29 = arith.addf %26, %28 : vector<4x8x8xf32>
    %cst_12 = arith.constant dense<0xFF800000> : vector<4x8xf32>
    %30 = vector.multi_reduction <maximumf>, %29, %cst_12 [2] : vector<4x8x8xf32> to vector<4x8xf32>
    %31 = vector.shape_cast %30 : vector<4x8xf32> to vector<4x8x1xf32>
    %32 = vector.broadcast %31 : vector<4x8x1xf32> to vector<4x8x8xf32>
    %33 = arith.subf %29, %32 : vector<4x8x8xf32>
    %34 = math.exp %33 : vector<4x8x8xf32>
    %cst_13 = arith.constant dense<0.000000e+00> : vector<4x8xf32>
    %35 = vector.multi_reduction <add>, %34, %cst_13 [2] : vector<4x8x8xf32> to vector<4x8xf32>
    %36 = vector.shape_cast %35 : vector<4x8xf32> to vector<4x8x1xf32>
    %37 = tpu.reciprocal %36 {approx = true} : vector<4x8x1xf32> -> vector<4x8x1xf32>
    %38 = vector.broadcast %37 : vector<4x8x1xf32> to vector<4x8x8xf32>
    %39 = arith.mulf %34, %38 : vector<4x8x8xf32>
    %40 = arith.truncf %39 : vector<4x8x8xf32> to vector<4x8x8xbf16>
    %41 = arith.truncf %22 : vector<4x32x8xf32> to vector<4x32x8xbf16>
    "tpu.trace_start"() <{level = 10 : i32, message = "hqk,hdk->hqd"}> : () -> ()
    %cst_14 = arith.constant dense<0.000000e+00> : vector<4x8x32xf32>
    %42 = tpu.matmul %40, %41, %cst_14 {dimension_numbers = #tpu.dot_dimension_numbers<[2], [2], [1], [1], [0, 0, 0, 1, 1, 1], [0], [0]>} : vector<4x8x8xbf16>, vector<4x32x8xbf16>, vector<4x8x32xf32> -> vector<4x8x32xf32>
    "tpu.trace_stop"() : () -> ()
    %43 = arith.truncf %42 : vector<4x8x32xf32> to vector<4x8x32xbf16>
    %c0_15 = arith.constant 0 : index
    %c0_16 = arith.constant 0 : index
    %c0_17 = arith.constant 0 : index
    %c0_18 = arith.constant 0 : index
    %44 = vector.load %arg8[%c0_15, %c0_16, %c0_17, %c0_18] : memref<1x4x32x128xbf16, #tpu.memory_space<vmem>>, vector<1x4x32x128xbf16>
    %45 = vector.shape_cast %44 : vector<1x4x32x128xbf16> to vector<4x32x128xbf16>
    "tpu.trace_start"() <{level = 10 : i32, message = "hqd,hdj->hqj"}> : () -> ()
    %cst_19 = arith.constant dense<0.000000e+00> : vector<4x8x128xf32>
    %46 = tpu.matmul %43, %45, %cst_19 {dimension_numbers = #tpu.dot_dimension_numbers<[2], [1], [1], [2], [0, 0, 0, 1, 1, 2], [0], [0]>} : vector<4x8x32xbf16>, vector<4x32x128xbf16>, vector<4x8x128xf32> -> vector<4x8x128xf32>
    "tpu.trace_stop"() : () -> ()
    %cst_20 = arith.constant dense<0.000000e+00> : vector<8x128xf32>
    %47 = vector.multi_reduction <add>, %46, %cst_20 [0] : vector<4x8x128xf32> to vector<8x128xf32>
    %c0_21 = arith.constant 0 : index
    %c0_22 = arith.constant 0 : index
    %c0_23 = arith.constant 0 : index
    %48 = vector.load %arg9[%c0_21, %c0_22, %c0_23] : memref<1x1x128xf32, #tpu.memory_space<vmem>>, vector<1x1x128xf32>
    %49 = vector.shape_cast %48 : vector<1x1x128xf32> to vector<1x128xf32>
    %50 = vector.broadcast %49 : vector<1x128xf32> to vector<8x128xf32>
    %51 = arith.addf %47, %50 : vector<8x128xf32>
    %52 = arith.addf %8, %51 : vector<8x128xf32>
    %c0_24 = arith.constant 0 : index
    %c0_25 = arith.constant 0 : index
    %c0_26 = arith.constant 0 : index
    %53 = vector.load %arg10[%c0_24, %c0_25, %c0_26] : memref<1x1x128xf32, #tpu.memory_space<vmem>>, vector<1x1x128xf32>
    %54 = vector.shape_cast %53 : vector<1x1x128xf32> to vector<1x128xf32>
    %c0_27 = arith.constant 0 : index
    %c0_28 = arith.constant 0 : index
    %c0_29 = arith.constant 0 : index
    %55 = vector.load %arg11[%c0_27, %c0_28, %c0_29] : memref<1x1x128xf32, #tpu.memory_space<vmem>>, vector<1x1x128xf32>
    %56 = vector.shape_cast %55 : vector<1x1x128xf32> to vector<1x128xf32>
    %cst_30 = arith.constant dense<0.000000e+00> : vector<8xf32>
    %57 = vector.multi_reduction <add>, %52, %cst_30 [1] : vector<8x128xf32> to vector<8xf32>
    %58 = vector.shape_cast %57 : vector<8xf32> to vector<8x1xf32>
    %cst_31 = arith.constant 3.125000e-02 : f32
    %59 = vector.broadcast %cst_31 : f32 to vector<8x1xf32>
    %60 = arith.mulf %58, %59 : vector<8x1xf32>
    %61 = vector.broadcast %60 : vector<8x1xf32> to vector<8x128xf32>
    %62 = arith.subf %52, %61 : vector<8x128xf32>
    %63 = vector.broadcast %4 : vector<1x128xf32> to vector<8x128xf32>
    %64 = arith.mulf %62, %63 : vector<8x128xf32>
    %65 = arith.mulf %64, %64 : vector<8x128xf32>
    %cst_32 = arith.constant dense<0.000000e+00> : vector<8xf32>
    %66 = vector.multi_reduction <add>, %65, %cst_32 [1] : vector<8x128xf32> to vector<8xf32>
    %67 = vector.shape_cast %66 : vector<8xf32> to vector<8x1xf32>
    %cst_33 = arith.constant 3.125000e-02 : f32
    %68 = vector.broadcast %cst_33 : f32 to vector<8x1xf32>
    %69 = arith.mulf %67, %68 : vector<8x1xf32>
    %cst_34 = arith.constant 9.99999974E-6 : f32
    %70 = vector.broadcast %cst_34 : f32 to vector<8x1xf32>
    %71 = arith.addf %69, %70 : vector<8x1xf32>
    %72 = math.rsqrt %71 : vector<8x1xf32>
    %73 = vector.broadcast %72 : vector<8x1xf32> to vector<8x128xf32>
    %74 = arith.mulf %64, %73 : vector<8x128xf32>
    %75 = vector.broadcast %54 : vector<1x128xf32> to vector<8x128xf32>
    %76 = arith.mulf %74, %75 : vector<8x128xf32>
    %77 = vector.broadcast %56 : vector<1x128xf32> to vector<8x128xf32>
    %78 = arith.addf %76, %77 : vector<8x128xf32>
    %79 = arith.truncf %78 : vector<8x128xf32> to vector<8x128xbf16>
    %c0_35 = arith.constant 0 : index
    %c0_36 = arith.constant 0 : index
    %c0_37 = arith.constant 0 : index
    %80 = vector.load %arg12[%c0_35, %c0_36, %c0_37] : memref<1x128x128xbf16, #tpu.memory_space<vmem>>, vector<1x128x128xbf16>
    %81 = vector.shape_cast %80 : vector<1x128x128xbf16> to vector<128x128xbf16>
    %cst_38 = arith.constant dense<0.000000e+00> : vector<8x128xf32>
    %82 = tpu.matmul %79, %81, %cst_38 {dimension_numbers = #tpu.dot_dimension_numbers<[1], [0], [0], [1], [0, 0, 1, 1], [], []>} : vector<8x128xbf16>, vector<128x128xbf16>, vector<8x128xf32> -> vector<8x128xf32>
    %c0_39 = arith.constant 0 : index
    %c0_40 = arith.constant 0 : index
    %c0_41 = arith.constant 0 : index
    %83 = vector.load %arg13[%c0_39, %c0_40, %c0_41] : memref<1x1x128xf32, #tpu.memory_space<vmem>>, vector<1x1x128xf32>
    %84 = vector.shape_cast %83 : vector<1x1x128xf32> to vector<1x128xf32>
    %85 = vector.broadcast %84 : vector<1x128xf32> to vector<8x128xf32>
    %86 = arith.addf %82, %85 : vector<8x128xf32>
    %87 = arith.mulf %86, %86 : vector<8x128xf32>
    %88 = arith.mulf %86, %87 : vector<8x128xf32>
    %cst_42 = arith.constant 4.471500e-02 : f32
    %89 = vector.broadcast %cst_42 : f32 to vector<8x128xf32>
    %90 = arith.mulf %89, %88 : vector<8x128xf32>
    %91 = arith.addf %86, %90 : vector<8x128xf32>
    %cst_43 = arith.constant 0.797884583 : f32
    %92 = vector.broadcast %cst_43 : f32 to vector<8x128xf32>
    %93 = arith.mulf %92, %91 : vector<8x128xf32>
    %94 = math.tanh %93 : vector<8x128xf32>
    %cst_44 = arith.constant 1.000000e+00 : f32
    %95 = vector.broadcast %cst_44 : f32 to vector<8x128xf32>
    %96 = arith.addf %95, %94 : vector<8x128xf32>
    %cst_45 = arith.constant 5.000000e-01 : f32
    %97 = vector.broadcast %cst_45 : f32 to vector<8x128xf32>
    %98 = arith.mulf %97, %96 : vector<8x128xf32>
    %99 = arith.mulf %86, %98 : vector<8x128xf32>
    %100 = arith.truncf %99 : vector<8x128xf32> to vector<8x128xbf16>
    %c0_46 = arith.constant 0 : index
    %c0_47 = arith.constant 0 : index
    %c0_48 = arith.constant 0 : index
    %101 = vector.load %arg14[%c0_46, %c0_47, %c0_48] : memref<1x128x128xbf16, #tpu.memory_space<vmem>>, vector<1x128x128xbf16>
    %102 = vector.shape_cast %101 : vector<1x128x128xbf16> to vector<128x128xbf16>
    %cst_49 = arith.constant dense<0.000000e+00> : vector<8x128xf32>
    %103 = tpu.matmul %100, %102, %cst_49 {dimension_numbers = #tpu.dot_dimension_numbers<[1], [0], [0], [1], [0, 0, 1, 1], [], []>} : vector<8x128xbf16>, vector<128x128xbf16>, vector<8x128xf32> -> vector<8x128xf32>
    %c0_50 = arith.constant 0 : index
    %c0_51 = arith.constant 0 : index
    %c0_52 = arith.constant 0 : index
    %104 = vector.load %arg15[%c0_50, %c0_51, %c0_52] : memref<1x1x128xf32, #tpu.memory_space<vmem>>, vector<1x1x128xf32>
    %105 = vector.shape_cast %104 : vector<1x1x128xf32> to vector<1x128xf32>
    %106 = vector.broadcast %105 : vector<1x128xf32> to vector<8x128xf32>
    %107 = arith.addf %103, %106 : vector<8x128xf32>
    %108 = arith.addf %78, %107 : vector<8x128xf32>
    %c0_53 = arith.constant 0 : index
    %c0_54 = arith.constant 0 : index
    %c0_55 = arith.constant 0 : index
    %109 = vector.load %arg16[%c0_53, %c0_54, %c0_55] : memref<1x1x128xf32, #tpu.memory_space<vmem>>, vector<1x1x128xf32>
    %110 = vector.shape_cast %109 : vector<1x1x128xf32> to vector<1x128xf32>
    %c0_56 = arith.constant 0 : index
    %c0_57 = arith.constant 0 : index
    %c0_58 = arith.constant 0 : index
    %111 = vector.load %arg17[%c0_56, %c0_57, %c0_58] : memref<1x1x128xf32, #tpu.memory_space<vmem>>, vector<1x1x128xf32>
    %112 = vector.shape_cast %111 : vector<1x1x128xf32> to vector<1x128xf32>
    %cst_59 = arith.constant dense<0.000000e+00> : vector<8xf32>
    %113 = vector.multi_reduction <add>, %108, %cst_59 [1] : vector<8x128xf32> to vector<8xf32>
    %114 = vector.shape_cast %113 : vector<8xf32> to vector<8x1xf32>
    %cst_60 = arith.constant 3.125000e-02 : f32
    %115 = vector.broadcast %cst_60 : f32 to vector<8x1xf32>
    %116 = arith.mulf %114, %115 : vector<8x1xf32>
    %117 = vector.broadcast %116 : vector<8x1xf32> to vector<8x128xf32>
    %118 = arith.subf %108, %117 : vector<8x128xf32>
    %119 = vector.broadcast %4 : vector<1x128xf32> to vector<8x128xf32>
    %120 = arith.mulf %118, %119 : vector<8x128xf32>
    %121 = arith.mulf %120, %120 : vector<8x128xf32>
    %cst_61 = arith.constant dense<0.000000e+00> : vector<8xf32>
    %122 = vector.multi_reduction <add>, %121, %cst_61 [1] : vector<8x128xf32> to vector<8xf32>
    %123 = vector.shape_cast %122 : vector<8xf32> to vector<8x1xf32>
    %cst_62 = arith.constant 3.125000e-02 : f32
    %124 = vector.broadcast %cst_62 : f32 to vector<8x1xf32>
    %125 = arith.mulf %123, %124 : vector<8x1xf32>
    %cst_63 = arith.constant 9.99999974E-6 : f32
    %126 = vector.broadcast %cst_63 : f32 to vector<8x1xf32>
    %127 = arith.addf %125, %126 : vector<8x1xf32>
    %128 = math.rsqrt %127 : vector<8x1xf32>
    %129 = vector.broadcast %128 : vector<8x1xf32> to vector<8x128xf32>
    %130 = arith.mulf %120, %129 : vector<8x128xf32>
    %131 = vector.broadcast %110 : vector<1x128xf32> to vector<8x128xf32>
    %132 = arith.mulf %130, %131 : vector<8x128xf32>
    %133 = vector.broadcast %112 : vector<1x128xf32> to vector<8x128xf32>
    %134 = arith.addf %132, %133 : vector<8x128xf32>
    %c0_64 = arith.constant 0 : index
    %c0_65 = arith.constant 0 : index
    %135 = vector.load %arg19[%c0_64, %c0_65] : memref<8x128xf32, #tpu.memory_space<vmem>>, vector<8x128xf32>
    tpu.vector_store %arg19[%c0_64, %c0_65], %134 {strides = array<i32>} : memref<8x128xf32, #tpu.memory_space<vmem>>, vector<8x128xf32>,
    %c1_i32 = arith.constant 1 : i32
    %136 = arith.cmpi eq, %arg1, %c1_i32 : i32
    %137 = arith.extui %136 : i1 to i32
    %c0_i32_66 = arith.constant 0 : i32
    %138 = arith.cmpi ne, %137, %c0_i32_66 : i32
    scf.if %138 {
      %cst_67 = arith.constant dense<0.000000e+00> : vector<128xf32>
      %139 = vector.multi_reduction <add>, %134, %cst_67 [0] : vector<8x128xf32> to vector<128xf32>
      %140 = vector.shape_cast %139 : vector<128xf32> to vector<1x128xf32>
      %cst_68 = arith.constant 8.000000e+00 : f32
      %141 = vector.broadcast %cst_68 : f32 to vector<1x128xf32>
      %142 = arith.divf %140, %141 : vector<1x128xf32>
      %143 = vector.shape_cast %142 : vector<1x128xf32> to vector<1x1x128xf32>
      %c0_69 = arith.constant 0 : index
      %c0_70 = arith.constant 0 : index
      %c0_71 = arith.constant 0 : index
      %144 = vector.load %arg18[%c0_69, %c0_70, %c0_71] : memref<1x1x128xf32, #tpu.memory_space<vmem>>, vector<1x1x128xf32>
      tpu.vector_store %arg18[%c0_69, %c0_70, %c0_71], %143 {strides = array<i32>} : memref<1x1x128xf32, #tpu.memory_space<vmem>>, vector<1x1x128xf32>,
    } else {
    }
    return
  }
  func.func @transform_0(%arg0: i32, %arg1: i32) -> (i32, i32, i32) {
    %c0_i32 = arith.constant 0 : i32
    %c0_i32_0 = arith.constant 0 : i32
    %c0_i32_1 = arith.constant 0 : i32
    return %arg0, %c0_i32, %c0_i32_0 : i32, i32, i32
  }
  func.func @transform_1(%arg0: i32, %arg1: i32) -> (i32, i32, i32) {
    %c0_i32 = arith.constant 0 : i32
    %c0_i32_0 = arith.constant 0 : i32
    %c0_i32_1 = arith.constant 0 : i32
    return %arg0, %c0_i32, %c0_i32_0 : i32, i32, i32
  }
  func.func @transform_2(%arg0: i32, %arg1: i32) -> (i32, i32) {
    %c0_i32 = arith.constant 0 : i32
    %c0_i32_0 = arith.constant 0 : i32
    %c0_i32_1 = arith.constant 0 : i32
    return %c0_i32, %c0_i32_0 : i32, i32
  }
  func.func @transform_3(%arg0: i32, %arg1: i32) -> (i32, i32) {
    %c0_i32 = arith.constant 0 : i32
    %c0_i32_0 = arith.constant 0 : i32
    %c0_i32_1 = arith.constant 0 : i32
    return %c0_i32, %c0_i32_0 : i32, i32
  }
  func.func @transform_4(%arg0: i32, %arg1: i32) -> (i32, i32, i32) {
    %c0_i32 = arith.constant 0 : i32
    %c0_i32_0 = arith.constant 0 : i32
    %c0_i32_1 = arith.constant 0 : i32
    return %arg1, %c0_i32, %c0_i32_0 : i32, i32, i32
  }
  func.func @transform_5(%arg0: i32, %arg1: i32) -> (i32, i32, i32) {
    %c0_i32 = arith.constant 0 : i32
    %c0_i32_0 = arith.constant 0 : i32
    %c0_i32_1 = arith.constant 0 : i32
    return %arg1, %c0_i32, %c0_i32_0 : i32, i32, i32
  }
  func.func @transform_6(%arg0: i32, %arg1: i32) -> (i32, i32, i32, i32) {
    %c0_i32 = arith.constant 0 : i32
    %c0_i32_0 = arith.constant 0 : i32
    %c0_i32_1 = arith.constant 0 : i32
    %c0_i32_2 = arith.constant 0 : i32
    return %arg1, %c0_i32, %c0_i32_0, %c0_i32_1 : i32, i32, i32, i32
  }
  func.func @transform_7(%arg0: i32, %arg1: i32) -> (i32, i32, i32) {
    %c0_i32 = arith.constant 0 : i32
    %c0_i32_0 = arith.constant 0 : i32
    %c0_i32_1 = arith.constant 0 : i32
    return %arg1, %c0_i32, %c0_i32_0 : i32, i32, i32
  }
  func.func @transform_8(%arg0: i32, %arg1: i32) -> (i32, i32, i32) {
    %c0_i32 = arith.constant 0 : i32
    %c0_i32_0 = arith.constant 0 : i32
    %c0_i32_1 = arith.constant 0 : i32
    return %arg1, %c0_i32, %c0_i32_0 : i32, i32, i32
  }
  func.func @transform_9(%arg0: i32, %arg1: i32) -> (i32, i32, i32) {
    %c0_i32 = arith.constant 0 : i32
    %c0_i32_0 = arith.constant 0 : i32
    %c0_i32_1 = arith.constant 0 : i32
    return %arg1, %c0_i32, %c0_i32_0 : i32, i32, i32
  }
  func.func @transform_10(%arg0: i32, %arg1: i32) -> (i32, i32, i32) {
    %c0_i32 = arith.constant 0 : i32
    %c0_i32_0 = arith.constant 0 : i32
    %c0_i32_1 = arith.constant 0 : i32
    return %arg1, %c0_i32, %c0_i32_0 : i32, i32, i32
  }
  func.func @transform_11(%arg0: i32, %arg1: i32) -> (i32, i32, i32) {
    %c0_i32 = arith.constant 0 : i32
    %c0_i32_0 = arith.constant 0 : i32
    %c0_i32_1 = arith.constant 0 : i32
    return %arg1, %c0_i32, %c0_i32_0 : i32, i32, i32
  }
  func.func @transform_12(%arg0: i32, %arg1: i32) -> (i32, i32, i32) {
    %c0_i32 = arith.constant 0 : i32
    %c0_i32_0 = arith.constant 0 : i32
    %c0_i32_1 = arith.constant 0 : i32
    return %arg1, %c0_i32, %c0_i32_0 : i32, i32, i32
  }
  func.func @transform_13(%arg0: i32, %arg1: i32) -> (i32, i32, i32) {
    %c0_i32 = arith.constant 0 : i32
    %c0_i32_0 = arith.constant 0 : i32
    %c0_i32_1 = arith.constant 0 : i32
    return %arg1, %c0_i32, %c0_i32_0 : i32, i32, i32
  }
  func.func @transform_14(%arg0: i32, %arg1: i32) -> (i32, i32, i32) {
    %c0_i32 = arith.constant 0 : i32
    %c0_i32_0 = arith.constant 0 : i32
    %c0_i32_1 = arith.constant 0 : i32
    return %arg1, %c0_i32, %c0_i32_0 : i32, i32, i32
  }
  func.func @transform_15(%arg0: i32, %arg1: i32) -> (i32, i32, i32) {
    %c0_i32 = arith.constant 0 : i32
    %c0_i32_0 = arith.constant 0 : i32
    %c0_i32_1 = arith.constant 0 : i32
    return %arg1, %c0_i32, %c0_i32_0 : i32, i32, i32
  }
  func.func @transform_16(%arg0: i32, %arg1: i32) -> (i32, i32, i32) {
    %c0_i32 = arith.constant 0 : i32
    %c0_i32_0 = arith.constant 0 : i32
    %c0_i32_1 = arith.constant 0 : i32
    return %arg0, %c0_i32, %c0_i32_0 : i32, i32, i32
  }
}

</mosaic_0001>

<bundles_post_ra>
// kernel: tpu_custom_call.1
= control target key start
LH: loop header
LB: loop body
LE: loop exit
PB: predicated region body
PF: predicated region fallthrough
CT: control target
= control target key end

     0   :  { %s3955_s0 = inlined_call_operand.hbm [shape: f32[2,8,128], index: 0, kind: input, shape index: {}]   ;;  %s3956_s1 = inlined_call_operand.vmem [shape: f32[2,1,8], index: 1, kind: input, shape index: {}]   ;;  %s3957_s2 = inlined_call_operand.hbm [shape: f32[1,128], index: 2, kind: input, shape index: {}]   ;;  %s3958_s3 = inlined_call_operand.hbm [shape: f32[1,128], index: 3, kind: input, shape index: {}]   ;;  %s3959_s4 = inlined_call_operand.vmem [shape: bf16[2,384,128], index: 4, kind: input, shape index: {}]   ;;  %s3960_s5 = inlined_call_operand.vmem [shape: f32[2,384,1], index: 5, kind: input, shape index: {}]   ;;  %s3961_s6 = inlined_call_operand.vmem [shape: bf16[2,4,32,128], index: 6, kind: input, shape index: {}]   ;;  %s3962_s7 = inlined_call_operand.vmem [shape: f32[2,1,128], index: 7, kind: input, shape index: {}]   ;;  %s3963_s8 = inlined_call_operand.vmem [shape: f32[2,1,128], index: 8, kind: input, shape index: {}]   ;;  %s3964_s9 = inlined_call_operand.vmem [shape: f32[2,1,128], index: 9, kind: input, shape index: {}]   ;;  %s3965_s10 = inlined_call_operand.vmem [shape: bf16[2,128,128], index: 10, kind: input, shape index: {}]   ;;  %s3966_s11 = inlined_call_operand.vmem [shape: f32[2,1,128], index: 11, kind: input, shape index: {}]   ;;  %s3967_s12 = inlined_call_operand.vmem [shape: bf16[2,128,128], index: 12, kind: input, shape index: {}]   ;;  %s3968_s13 = inlined_call_operand.vmem [shape: f32[2,1,128], index: 13, kind: input, shape index: {}]   ;;  %s3969_s14 = inlined_call_operand.vmem [shape: f32[2,1,128], index: 14, kind: input, shape index: {}]   ;;  %s3970_s15 = inlined_call_operand.hbm [shape: f32[2,1,128], index: 15, kind: input, shape index: {}]   ;;  %s3971_s16 = inlined_call_operand.hbm [shape: f32[2,1,128], index: 16, kind: output, shape index: {}]  }
   0x1   :  { %3988 = sst [smem:[#allocation31_spill]] %s3955_s0 }
   0x2   :  { %3989 = sst [smem:[#allocation32_spill]] %s3957_s2 }
   0x3   :  { %3990 = sst [smem:[#allocation33_spill]] %s3958_s3 }
   0x4   :  { %3991 = sst [smem:[#allocation34_spill]] %s3959_s4 }
   0x5   :  { %3992 = sst [smem:[#allocation35_spill]] %s3960_s5 }
   0x6   :  { %3993 = sst [smem:[#allocation36_spill]] %s3961_s6 }
   0x7   :  { %3994 = sst [smem:[#allocation37_spill]] %s3962_s7 }
   0x8   :  { %3995 = sst [smem:[#allocation38_spill]] %s3963_s8 }
   0x9   :  { %3996 = sst [smem:[#allocation39_spill]] %s3964_s9 }
   0xa   :  { %3997 = sst [smem:[#allocation40_spill]] %s3965_s10 }
   0xb   :  { %3998 = sst [smem:[#allocation41_spill]] %s3966_s11 }
   0xc   :  { %3999 = sst [smem:[#allocation42_spill]] %s3967_s12 }
   0xd   :  { %4000 = sst [smem:[#allocation43_spill]] %s3968_s13 }
   0xe   :  { %4001 = sst [smem:[#allocation44_spill]] %s3969_s14 }
   0xf   :  { %4002 = sst [smem:[#allocation45_spill]] %s3970_s15 }
  0x10   :  { %4003 = sst [smem:[#allocation46_spill]] %s3971_s16 }
  0x11   :  { %21 = vsyncpa [#allocation4], 0 }
  0x12   :  { %23 = vsyncpa [#allocation4 + $0x1], 0 }
  0x13   :  { %24 = vsyncpa [#allocation7], 0 }
  0x14   :  { %25 = vsyncpa [#allocation10], 0 }
  0x15   :  { %27 = vsyncpa [#allocation10 + $0x1], 0 }
  0x16   :  { %28 = vsyncpa [#allocation5], 0 }
  0x17   :  { %30 = vsyncpa [#allocation5 + $0x1], 0  ;;  %s3396_s21 = smov 0   ;;  %s3398_s22 = smov 0  }
  0x18   :  { %s3400_s23 = smov 0   ;;  %s3402_s24 = smov 0  }
  0x19   :  { %s3404_s25 = smov 0   ;;  %s3406_s26 = smov 0  }
  0x1a   :  { %s3408_s27 = smov 0   ;;  %s3410_s28 = smov 0  }
  0x1b   :  { %s3412_s29 = smov 0   ;;  %s3414_s30 = smov 0  }
  0x1c   :  { %s3416_s0 = smov 0  }
  0x1d LB: > { %4004 = sst [smem:[#allocation16_spill]] %s3268_s22  ;;  %s2572_s17 = sadd.s32 4294967295, %s3304_s0   ;;  %s3304_s0 = sphi %s3416_s0, %s36_s0   ;;  %s3300_s30 = sphi %s3414_s30, %s4070_s30   ;;  %s3296_s29 = sphi %s3412_s29, %s4069_s29   ;;  %s3292_s28 = sphi %s3410_s28, %s4068_s28   ;;  %s3288_s27 = sphi %s3408_s27, %s4067_s27   ;;  %s3284_s26 = sphi %s3406_s26, %s4066_s26   ;;  %s3280_s25 = sphi %s3404_s25, %s4065_s25   ;;  %s3276_s24 = sphi %s3402_s24, %s4064_s24   ;;  %s3272_s23 = sphi %s3400_s23, %s4063_s23   ;;  %s3268_s22 = sphi %s3398_s22, %s4062_s22   ;;  %s3264_s21 = sphi %s3396_s21, %s4061_s21  }
  0x1e   : > { %4005 = sst [smem:[#allocation17_spill]] %s3272_s23  ;;  %p2574_p0 = scmp.ge.s32.totalorder %s3304_s0, 1 }
  0x1f   : > { %4006 = sst [smem:[#allocation18_spill]] %s3276_s24  ;;  %p3453_p1 = scmp.eq.s32.totalorder %s2572_s17, 0 }
  0x20   : > { %4007 = sst [smem:[#allocation19_spill]] %s3280_s25  ;;  %p3457_p2 = scmp.eq.s32.totalorder %s2572_s17, 3 }
  0x21   : > { %4008 = sst [smem:[#allocation20_spill]] %s3284_s26  ;;  %p485_p3 = scmp.lt.s32.totalorder %s3304_s0, 5 }
  0x22   : > { %4009 = sst [smem:[#allocation21_spill]] %s3292_s28  ;;  %s3306_s17 = smov [#allocation6]  }
  0x23   : > { %4010 = sst [smem:[#allocation22_spill]] %s3296_s29  ;;  %p3465_p4 = pnand %p2574_p0, %p485_p3 }
  0x24   : > { %4011 = sst [smem:[#allocation23_spill]] %s3300_s30  ;;  %s499_s12 = sshll.u32 %s3306_s17, 4  ;;  %s500_s12 = int_to_ptr.vmem [resolvable:$true] %s499_s12 }
  0x25   : > { %4012 = sst [smem:[#allocation24_spill]] %s3304_s0  ;;  %p2871_p5 = pneg %p3465_p4 }
  0x26   : > { %s4015_s2 = sld [smem:[#allocation32_spill]]  ;;  %s3307_s11 = smov [#allocation8]  }
  0x27   : > { %s4017_s3 = sld [smem:[#allocation33_spill]]  ;;  %p2872_p6 = pnand %p2871_p5, %p3453_p1 }
  0x28   : > { %s511_s10 = sshll.u32 %s3307_s11, 4  ;;  %s2573_s17 = sadd.s32 4294967294, %s3304_s0   ;;  %s512_s10 = int_to_ptr.vmem [resolvable:$true] %s511_s10 }
  0x29   : > { %p62_p7 = scmp.ne.s32.totalorder %s3284_s26, %s3280_s25  ;;  %p63_p8 = scmp.eq.s32.totalorder %s3304_s0, 0 }
  0x2a   : > { %p68_p9 = scmp.ne.s32.totalorder %s3280_s25, %s3276_s24  ;;  %p478_p10 = scmp.eq.s32.totalorder %s2573_s17, 3 }
  0x2b   : > { %p3486_p11 = por %p63_p8, %p62_p7  ;;  %p3492_p12 = por %p3457_p2, %p62_p7 }
  0x2c   : > { %s497_s14 = sshll.u32 %s4015_s2, 4  ;;  %p3498_p13 = por %p3453_p1, %p68_p9  ;;  %s498_s14 = int_to_ptr.hbm [resolvable:$true] %s497_s14 }
  0x2d   : > { %s509_s2 = sshll.u32 %s4017_s3, 4  ;;  %p3502_p0 = por %p478_p10, %p68_p9  ;;  %s510_s2 = int_to_ptr.hbm [resolvable:$true] %s509_s2 }
  0x2e   : > { %2874 = dma.hbm_to_vmem [thread:$0]  (!%p2872_p6), %s498_s14, 16, %s500_s12, [#allocation7]  }
  0x2f   : > { %2877 = dma.hbm_to_vmem [thread:$0]  (!%p2872_p6), %s510_s2, 16, %s512_s10, [#allocation7]  }
  0x30   : > { %s4019_s11 = scalar_select %p3492_p12, 1, 0 }
  0x31   : > { %s4022_s10 = scalar_select %p3502_p0, 1, 0 }
  0x32   : > { %4020 = sst [smem:[#allocation25_spill]] %s4019_s11  ;;  %p2891_p3 = scmp.lt.s32.totalorder %s3304_s0, 4 }
  0x33   : > { %4023 = sst [smem:[#allocation26_spill]] %s4022_s10  ;;  %s522_s12 = sand.u32 1, %s3284_s26  }
  0x34   : > { %s2578_s14 = sshll.u32 %s522_s12, 3  ;;  %s2579_s19 = sshll.u32 %s3300_s30, 3 }
  0x35   : > { %s4024_s8 = sld [smem:[#allocation31_spill]]  ;;  %s526_s3 = scalar_lea.vmem [#allocation3], %s2578_s14 }
  0x36   : > { %s534_s24 = sshll.u32 %s526_s3, 4  ;;  %p2879_p2 = pnand %p2891_p3, %p3486_p11  ;;  %s535_s24 = int_to_ptr.vmem [resolvable:$true] %s534_s24 }
  0x37   : > { %s523_s11 = scalar_lea.sflag [#allocation4], %s522_s12  ;;  %s45_s20 = sadd.s32 1, %s3296_s29 }
  0x38   : > { %p46_p5 = scmp.ge.s32.totalorder %s45_s20, 2  ;;  %p442_p6 = scmp.ne.s32.totalorder %s3272_s23, %s3268_s22 }
  0x39   : > { %p448_p7 = scmp.ne.s32.totalorder %s3268_s22, %s3264_s21  ;;  %s4026_s3 = sadd.s32 1, %s3300_s30 }
  0x3a   : > { %s4072_s20 = smov (%p46_p5, %s45_s20), 0  ;;  %s4074_s3 = smov (!%p46_p5, %s4026_s3), %s3300_s30 }
  0x3b   : > { %s530_s9 = scalar_lea.hbm %s4024_s8, %s2579_s19  ;;  %s435_s8 = sadd.s32 1, %s3272_s23 }
  0x3c   : > { %s532_s10 = sshll.u32 %s530_s9, 4  ;;  %4025 = sst [smem:[#allocation27_spill]] %s4072_s20  ;;  %s533_s10 = int_to_ptr.hbm [resolvable:$true] %s532_s10 }
  0x3d   : > { %2881 = dma.hbm_to_vmem [thread:$0]  (!%p2879_p2), %s533_s10, 128, %s535_s24, %s523_s11  }
  0x3e   : > { %s432_s9 = ssub.s32 %s3296_s29, %s4072_s20  ;;  %p3531_p9 = por %p442_p6, %p63_p8 }
  0x3f   : > { %p50_p10 = scmp.ge.s32.totalorder %s4074_s3, 2  ;;  %p433_p11 = scmp.eq.s32.totalorder %s432_s9, 0 }
  0x40   : > { %p3537_p2 = por %p448_p7, %p3453_p1  ;;  %s623_s24 = sand.u32 1, %s3272_s23  }
  0x41   : > { %s4076_s3 = smov (%p50_p10, %s4074_s3), 0  ;;  %s4031_s15 = sld [smem:[#allocation45_spill]] }
  0x42   : > { %4029 = sst [smem:[#allocation28_spill]] %s4076_s3  ;;  %s52_s10 = ssub.s32 %s3300_s30, %s4076_s3 }
  0x43   : > { %s3545_s11 = scalar_select %p433_p11, %s3272_s23, %s435_s8  }
  0x44   : > { %p53_p8 = scmp.eq.s32.totalorder %s52_s10, 0  ;;  %s626_s17 = scalar_lea.vmem [#allocation9], %s623_s24 }
  0x45   : > { %4030 = sst [smem:[#allocation29_spill]] %s3545_s11  ;;  %s633_s20 = sshll.u32 %s626_s17, 4  ;;  %s634_s20 = int_to_ptr.vmem [resolvable:$true] %s633_s20 }
  0x46   : > { %s4032_s9 = sadd.s32 1, %s3284_s26  ;;  %p2882_p5 = pnand %p2891_p3, %p3531_p9 }
  0x47   : > { %s629_s19 = scalar_lea.hbm %s4031_s15, %s3296_s29  ;;  %s624_s4 = scalar_lea.sflag [#allocation10], %s623_s24 }
  0x48   : > { %s3556_s5 = scalar_select %p53_p8, %s3284_s26, %s4032_s9  }
  0x49   : > { %s631_s7 = sshll.u32 %s629_s19, 4  ;;  %642 = sbr.rel (%p3465_p4) target bundleno = 2310 (0x906), region = 84  ;;  %s632_s7 = int_to_ptr.hbm [resolvable:$true] %s631_s7 }
  0x4a   : > { %4033 = sst [smem:[#allocation30_spill]] %s3556_s5  ;;  %s3565_s8 = sand.u32 (!%p3465_p4), 1, %s3280_s25  }
  0x4b   : > { %2884 = dma.hbm_to_vmem [thread:$0]  (!%p2882_p5), %s632_s7, 16, %s634_s20, %s624_s4  }
  0x4c   : > { %s2581_s10 = sshll.u32 (!%p3465_p4), %s3565_s8, 3  ;;  %s645_s12 = scalar_lea.sflag (!%p3465_p4), [#allocation4], %s3565_s8 }
  0x4d   : > { %s3569_s14 = scalar_lea.vmem (!%p3465_p4), [#allocation3], %s2581_s10 }
  0x4e   : > { %3247 = dma.done.wait (%p3498_p13), %s645_s12, 128  }
  0x4f   : > { %3249 = vsyncadd (%p3498_p13), %s645_s12, 4294967168 }
  0x50   : > { %3251 = dma.done.wait (%p3453_p1), [#allocation7], 32  }
  0x51   : > { %3253 = vsyncadd (%p3453_p1), [#allocation7], 4294967264  ;;  %s664_s4 = sand.u32 1, %s3268_s22  }
  0x52   : > { %s665_s7 = scalar_lea.sflag [#allocation10], %s664_s4  ;;  %s3580_s13 = scalar_lea.vmem [#allocation9], %s664_s4 }
  0x53   : > { %3255 = dma.done.wait (%p3537_p2), %s665_s7, 16  }
  0x54   : > { %3257 = vsyncadd (%p3537_p2), %s665_s7, 4294967280  ;;  %p766_p4 = scmp.lt.s32.totalorder %s3292_s28, 1  ;;  %v813_v0 = vlaneseq  ;;  %p769_p13 = scmp.lt.s32.totalorder %s3288_s27, 1  ;;  %v3308_v2 = vmov 0.0  }
  0x55   : > { %s4034_s6 = sld [smem:[#allocation36_spill]]  ;;  %s765_s4 = scalar_lea.vmem [#allocation11], %s3565_s8 }
  0x56   : > { %s3589_s18 = scalar_select %p766_p4, %s3292_s28, 1  ;;  %v814_v1 = vand.u32 127, %v813_v0 }
  0x57   : > { %s3592_s2 = scalar_select %p769_p13, %s3288_s27, 1 }
  0x58   : > { %vm815_vm0 = vcmp.lt.s32.totalorder %v814_v1, 32  ;;  %s4035_s20 = sld [smem:[#allocation34_spill]]  ;;  %p2593_p1 = scmp.ne.s32.totalorder %s3288_s27, 0 }
  0x59   : > { %s2855_s24 = smul.u32 192, %s3592_s2  ;;  %s2801_s19 = sshll.u32 %s3592_s2, 6  ;;  %v3600_v3 = vsel %vm815_vm0, 1.0, %v3308_v2 }
  0x5a   : > { %s2856_s17 = smul.u32 384, %s3592_s2  ;;  %s4037_s26 = sld [smem:[#allocation35_spill]] }
  0x5b   : > { %s3606_s12 = scalar_lea.vmem %s4034_s6, %s2801_s19  ;;  %s4040_s7 = sld [smem:[#allocation40_spill]] }
  0x5c   : > { %s4041_s21 = sld [smem:[#allocation41_spill]] }
  0x5d   : > { %s4042_s29 = sld [smem:[#allocation42_spill]] }
  0x5e   : > { %s3611_s16 = scalar_lea.vmem %s4035_s20, %s2855_s24  ;;  %s4043_s11 = sld [smem:[#allocation43_spill]] }
  0x5f   : > { %s4044_s10 = sld [smem:[#allocation44_spill]] }
  0x60   : > { %s3620_s25 = scalar_lea.vmem %s4037_s26, %s2856_s17 }
  0x61   : > { %s3633_s20 = scalar_lea.vmem %s4040_s7, %s2801_s19  ;;  %821 = sbr.rel (%p2593_p1) target bundleno = 372 (0x174), region = 104 }
  0x62   : > { %s800_s30 = scalar_lea.vmem %s4041_s21, %s3592_s2 }
  0x63   : > { %s3642_s17 = scalar_lea.vmem %s4042_s29, %s2801_s19 }
  0x64   : > { %s808_s9 = scalar_lea.vmem %s4043_s11, %s3592_s2 }
  0x65   : > { %s811_s28 = scalar_lea.vmem %s4044_s10, %s3592_s2 }
  0x66   : > { %v822_v4 = vld [vmem:[%s3569_s14] sm:$0xff]  ;;  %v2988_v19 = vld [vmem:[#allocation6] ss:$0 sm:$0xff]  ;;  %v2989_v21 = vld [vmem:[#allocation8] ss:$0 sm:$0xff] }
  0x67   : > { %825 = vadd.xlane.f32.xlu0 %v822_v4 }
  0xda   : > { %v826_v5 = vpop.xlane.xlu0 %825 }
  0xdb   : > { %v827_v6 = vmul.f32 0.03125, %v826_v5 }
  0xdd   : > { %v828_v7 = vsub.f32 %v822_v4, %v827_v6 }
  0xdf   : > { %v829_v8 = vmul.f32 %v3600_v3, %v828_v7 }
  0xe1   : > { %v830_v9 = vmul.f32 %v829_v8, %v829_v8 }
  0xe3   : > { %831 = vadd.xlane.f32.xlu0 %v830_v9 }
 0x156   : > { %v832_v10 = vpop.xlane.xlu0 %831 }
 0x157   : > { %v833_v11 = vmul.f32 0.03125, %v832_v10 }
 0x159   : > { %v834_v12 = vadd.f32 1e-05, %v833_v11 }
 0x15b   : > { %2990 = vrsqrt.f32 %v834_v12  ;;  %vm841_vm2 = vweird.f32 %v834_v12 }
 0x161   : > { %v2991_v13 = vpop.eup %2990 }
 0x162   : > { %v836_v14 = vmul.f32 %v2991_v13, %v834_v12  ;;  %vm842_vm1 = vweird.f32 %v2991_v13 }
 0x163   : > { %vm843_vm3 = vmor %vm841_vm2, %vm842_vm1 }
 0x164   : > { %v837_v15 = vmul.f32 %v2991_v13, %v836_v14 }
 0x166   : > { %v838_v16 = vmul.f32 0.5, %v837_v15 }
 0x168   : > { %v839_v17 = vsub.f32 1.5, %v838_v16 }
 0x16a   : > { %v840_v18 = vmul.f32 %v2991_v13, %v839_v17 }
 0x16c   : > { %v844_v20 = vsel %vm843_vm3, %v2991_v13, %v840_v18 }
 0x16d   : > { %v845_v22 = vmul.f32 %v844_v20, %v829_v8 }
 0x16f   : > { %v849_v23 = vmul.f32 %v2988_v19, %v845_v22 }
 0x171   : > { %v853_v24 = vadd.f32 %v2989_v21, %v849_v23 }
 0x173   : > { %854 = vst [vmem:[#allocation2] sm:$0xff] %v853_v24 }
 0x174 PF: > { %v907_v25 = vld [vmem:[%s3620_s25 + $0x10] sm:$0xff]  ;;  %v905_v26 = vld [vmem:[%s3620_s25] sm:$0xff]  ;;  %v3309_v28 = vmov 0   ;;  %v908_v31 = vld [vmem:[%s3620_s25 + $0x18] sm:$0xff]  ;;  %vm1630_vm4 = vcmask 261120   ;;  %vm1731_vm5 = vcmask 64512  }
 0x175   : > { %2993 = vset.pattern.permute.xlu1 %v3309_v28  ;;  %2992 = vset.pattern.permute.xlu0 %v3309_v28  ;;  %v909_v30 = vld [vmem:[%s3620_s25 + $0x20] sm:$0xff]  ;;  %v906_v32 = vld [vmem:[%s3620_s25 + $0x8] sm:$0xff]  ;;  %v2814_v34 = vld [vmem:[%s3611_s16 + $0x50] sm:$0xff]  ;;  %s4048_s15 = sld [smem:[#allocation38_spill]]  ;;  %p2798_p3 = scmp.ne.s32.totalorder %s3288_s27, 1 }
 0x176   : > { %965 = vperm.xlu1 %2993, %v907_v25   ;;  %955 = vperm.xlu0 %2992, %v905_v26   ;;  %v2804_v33 = vld [vmem:[%s3611_s16] sm:$0xff]  ;;  %v2818_v35 = vld [vmem:[%s3611_s16 + $0x70] sm:$0xff]  ;;  %v924_v38 = vld [vmem:[%s3620_s25 + $0x98] sm:$0xff]  ;;  %s4050_s26 = sld [smem:[#allocation39_spill]] }
 0x177   : > { %2994 = vset.pattern.permute.xlu2 %v3309_v28  ;;  %v2822_v36 = vld [vmem:[%s3611_s16 + $0x90] sm:$0xff]  ;;  %v913_v37 = vld [vmem:[%s3620_s25 + $0x40] sm:$0xff]  ;;  %v910_v40 = vld [vmem:[%s3620_s25 + $0x28] sm:$0xff] }
 0x178   : > { %975 = vperm.xlu2 %2994, %v909_v30   ;;  %v923_v39 = vld [vmem:[%s3620_s25 + $0x90] sm:$0xff]  ;;  %v914_v41 = vld [vmem:[%s3620_s25 + $0x48] sm:$0xff]  ;;  %v917_v42 = vld [vmem:[%s3620_s25 + $0x60] sm:$0xff] }
 0x179   : > { %v2805_v43 = vld [vmem:[%s3611_s16 + $0x8] sm:$0xff]  ;;  %v2815_v44 = vld [vmem:[%s3611_s16 + $0x58] sm:$0xff]  ;;  %v911_v47 = vld [vmem:[%s3620_s25 + $0x30] sm:$0xff] }
 0x17a   : > { %v855_v27 = vld [vmem:[#allocation2] sm:$0xff]  ;;  %v2819_v45 = vld [vmem:[%s3611_s16 + $0x78] sm:$0xff]  ;;  %v922_v48 = vld [vmem:[%s3620_s25 + $0x88] sm:$0xff] }
 0x17b   : > { %v856_v29 = vpack.c.bf16 %v855_v27, %v855_v27  ;;  %v2823_v46 = vld [vmem:[%s3611_s16 + $0x98] sm:$0xff]  ;;  %v921_v49 = vld [vmem:[%s3620_s25 + $0x80] sm:$0xff]  ;;  %v918_v50 = vld [vmem:[%s3620_s25 + $0x68] sm:$0xff]  ;;  %s4049_s3 = scalar_lea.vmem %s4048_s15, %s3592_s2 }
 0x17c   : > { %v912_v51 = vld [vmem:[%s3620_s25 + $0x38] sm:$0xff]  ;;  %v915_v52 = vld [vmem:[%s3620_s25 + $0x50] sm:$0xff]  ;;  %v2816_v54 = vld [vmem:[%s3611_s16 + $0x60] sm:$0xff]  ;;  %s4051_s29 = scalar_lea.vmem %s4050_s26, %s3592_s2 }
 0x17d   : > { %1344 = vmatpush.bf16.xpose.msra.mxu0 %v856_v29  ;;  %2852 = vmatpush.bf16.xpose.msra.mxu1 %v856_v29  ;;  %v2806_v53 = vld [vmem:[%s3611_s16 + $0x10] sm:$0xff]  ;;  %v2820_v55 = vld [vmem:[%s3611_s16 + $0x80] sm:$0xff]  ;;  %v920_v58 = vld [vmem:[%s3620_s25 + $0x78] sm:$0xff] }
 0x17e   : > { %2853 = vmatpush.bf16.xpose.msra.mxu2 %v856_v29  ;;  %2854 = vmatpush.bf16.xpose.msra.mxu3 %v856_v29  ;;  %v2824_v56 = vld [vmem:[%s3611_s16 + $0xa0] sm:$0xff]  ;;  %v919_v57 = vld [vmem:[%s3620_s25 + $0x70] sm:$0xff]  ;;  %v916_v59 = vld [vmem:[%s3620_s25 + $0x58] sm:$0xff] }
 0x17f   : > { %970 = vperm.xlu1 %2993, %v908_v31   ;;  %960 = vperm.xlu0 %2992, %v906_v32   ;;  %v927_v60 = vld [vmem:[%s3620_s25 + $0xb0] sm:$0xff]  ;;  %v928_v62 = vld [vmem:[%s3620_s25 + $0xb8] sm:$0xff]  ;;  %v2817_v0 = vld [vmem:[%s3611_s16 + $0x68] sm:$0xff] }
 0x180   : > { %995 = vperm.xlu2 %2994, %v913_v37   ;;  %v931_v61 = vld [vmem:[%s3620_s25 + $0xd0] sm:$0xff]  ;;  %v2807_v63 = vld [vmem:[%s3611_s16 + $0x18] sm:$0xff]  ;;  %v2821_v1 = vld [vmem:[%s3611_s16 + $0x88] sm:$0xff] }
 0x181   : > { %v2825_v2 = vld [vmem:[%s3611_s16 + $0xa8] sm:$0xff]  ;;  %v932_v4 = vld [vmem:[%s3620_s25 + $0xd8] sm:$0xff]  ;;  %v925_v6 = vld [vmem:[%s3620_s25 + $0xa0] sm:$0xff] }
 0x182   : > { %v926_v5 = vld [vmem:[%s3620_s25 + $0xa8] sm:$0xff]  ;;  %v935_v7 = vld [vmem:[%s3620_s25 + $0xf0] sm:$0xff]  ;;  %v929_v8 = vld [vmem:[%s3620_s25 + $0xc0] sm:$0xff] }
 0x183   : > { %v936_v9 = vld [vmem:[%s3620_s25 + $0xf8] sm:$0xff]  ;;  %v2808_v10 = vld [vmem:[%s3611_s16 + $0x20] sm:$0xff]  ;;  %v2826_v11 = vld [vmem:[%s3611_s16 + $0xb0] sm:$0xff] }
 0x184   : > { %1345 = vmatmul.bf16.vlgmr.msra.gmra.mxu0 %v2804_v33  ;;  %1395 = vmatmul.bf16.vlgmr.msra.gmra.mxu1 %v2814_v34  ;;  %v930_v12 = vld [vmem:[%s3620_s25 + $0xc8] sm:$0xff]  ;;  %v933_v14 = vld [vmem:[%s3620_s25 + $0xe0] sm:$0xff]  ;;  %v940_v15 = vld [vmem:[%s3620_s25 + $0x118] sm:$0xff] }
 0x185   : > { %1415 = vmatmul.bf16.vlgmr.msra.gmra.mxu2 %v2818_v35  ;;  %1435 = vmatmul.bf16.vlgmr.msra.gmra.mxu3 %v2822_v36  ;;  %v934_v13 = vld [vmem:[%s3620_s25 + $0xe8] sm:$0xff]  ;;  %v2827_v17 = vld [vmem:[%s3611_s16 + $0xb8] sm:$0xff]  ;;  %v937_v18 = vld [vmem:[%s3620_s25 + $0x100] sm:$0xff] }
 0x186   : > { %v2809_v16 = vld [vmem:[%s3611_s16 + $0x28] sm:$0xff]  ;;  %v2810_v21 = vld [vmem:[%s3611_s16 + $0x30] sm:$0xff]  ;;  %v952_v26 = vld [vmem:[%s3620_s25 + $0x178] sm:$0xff] }
 0x187   : > { %1050 = vperm.xlu1 %2993, %v924_v38   ;;  %1045 = vperm.xlu0 %2992, %v923_v39   ;;  %v938_v20 = vld [vmem:[%s3620_s25 + $0x108] sm:$0xff]  ;;  %v951_v23 = vld [vmem:[%s3620_s25 + $0x170] sm:$0xff]  ;;  %v2811_v27 = vld [vmem:[%s3611_s16 + $0x38] sm:$0xff] }
 0x188   : > { %980 = vperm.xlu2 %2994, %v910_v40   ;;  %v947_v31 = vld [vmem:[%s3620_s25 + $0x150] sm:$0xff]  ;;  %v949_v35 = vld [vmem:[%s3620_s25 + $0x160] sm:$0xff] }
 0x189   : > { %v2812_v36 = vld [vmem:[%s3611_s16 + $0x40] sm:$0xff] }
 0x18f   : > { %1000 = vperm.xlu1 %2993, %v914_v41   ;;  %1015 = vperm.xlu0 %2992, %v917_v42   ;;  %v941_v42 = vld [vmem:[%s3620_s25 + $0x120] sm:$0xff] }
 0x190   : > { %985 = vperm.xlu2 %2994, %v911_v47  }
 0x194   : > { %1350 = vmatmul.bf16.gmra.mxu0 %v2805_v43  ;;  %1400 = vmatmul.bf16.gmra.mxu1 %v2815_v44 }
 0x195   : > { %1420 = vmatmul.bf16.gmra.mxu2 %v2819_v45  ;;  %1440 = vmatmul.bf16.gmra.mxu3 %v2823_v46 }
 0x197   : > { %1040 = vperm.xlu1 %2993, %v922_v48   ;;  %1035 = vperm.xlu0 %2992, %v921_v49   ;;  %v2813_v48 = vld [vmem:[%s3611_s16 + $0x48] sm:$0xff]  ;;  %s4045_s16 = scalar_lea.vmem %s3956_s1, %s3589_s18 }
 0x198   : > { %1020 = vperm.xlu2 %2994, %v918_v50  }
 0x19f   : > { %990 = vperm.xlu1 %2993, %v912_v51   ;;  %1005 = vperm.xlu0 %2992, %v915_v52  }
 0x1a0   : > { %1025 = vperm.xlu2 %2994, %v919_v57  }
 0x1a4   : > { %1355 = vmatmul.bf16.gmra.mxu0 %v2806_v53  ;;  %1405 = vmatmul.bf16.gmra.mxu1 %v2816_v54 }
 0x1a5   : > { %1425 = vmatmul.bf16.gmra.mxu2 %v2820_v55  ;;  %1445 = vmatmul.bf16.gmra.mxu3 %v2824_v56 }
 0x1a7   : > { %1030 = vperm.xlu1 %2993, %v920_v58   ;;  %1010 = vperm.xlu0 %2992, %v916_v59  }
 0x1a8   : > { %1065 = vperm.xlu2 %2994, %v927_v60  }
 0x1af   : > { %1085 = vperm.xlu1 %2993, %v931_v61   ;;  %1070 = vperm.xlu0 %2992, %v928_v62  }
 0x1b0   : > { %1090 = vperm.xlu2 %2994, %v932_v4  }
 0x1b4   : > { %1360 = vmatmul.bf16.gmra.mxu0 %v2807_v63  ;;  %1410 = vmatmul.bf16.gmra.mxu1 %v2817_v0 }
 0x1b5   : > { %1430 = vmatmul.bf16.gmra.mxu2 %v2821_v1  ;;  %1450 = vmatmul.bf16.gmra.mxu3 %v2825_v2 }
 0x1b7   : > { %1060 = vperm.xlu1 %2993, %v926_v5   ;;  %1055 = vperm.xlu0 %2992, %v925_v6  }
 0x1b8   : > { %1105 = vperm.xlu2 %2994, %v935_v7  }
 0x1bf   : > { %1075 = vperm.xlu1 %2993, %v929_v8   ;;  %1110 = vperm.xlu0 %2992, %v936_v9  }
 0x1c0   : > { %1080 = vperm.xlu2 %2994, %v930_v12  }
 0x1c4   : > { %1365 = vmatmul.bf16.gmra.mxu0 %v2808_v10 }
 0x1c5   : > { %1455 = vmatmul.bf16.gmra.mxu3 %v2826_v11 }
 0x1c7   : > { %1100 = vperm.xlu1 %2993, %v934_v13   ;;  %1095 = vperm.xlu0 %2992, %v933_v14  }
 0x1cf   : > { %1130 = vperm.xlu1 %2993, %v940_v15  }
 0x1d2   : > { %v976_v19 = vpop.permute.xlu2 %975 }
 0x1d4   : > { %1370 = vmatmul.bf16.gmra.mxu0 %v2809_v16 }
 0x1d5   : > { %1460 = vmatmul.bf16.gmra.mxu3 %v2827_v17 }
 0x1d7   : > { %1115 = vperm.xlu1 %2993, %v937_v18  }
 0x1da   : > { %v3712_v22 = vpop.permute.xlu2 %995 }
 0x1df   : > { %1120 = vperm.xlu1 %2993, %v938_v20  }
 0x1e2   : > { %v981_v28 = vpop.permute.xlu2 %980 }
 0x1e4   : > { %1375 = vmatmul.bf16.gmra.mxu0 %v2810_v21 }
 0x1e7   : > { %1185 = vperm.xlu1 %2993, %v951_v23  }
 0x1e8   : > { %v3715_v24 = vpop.permute.xlu1 %965  ;;  %v956_v25 = vpop.permute.xlu0 %955 }
 0x1ea   : > { %v3722_v32 = vpop.permute.xlu2 %985 }
 0x1ef   : > { %1190 = vperm.xlu1 %2993, %v952_v26  }
 0x1f1   : > { %v3719_v29 = vpop.permute.xlu1 %970  ;;  %v961_v30 = vpop.permute.xlu0 %960 }
 0x1f2   : > { %v3734_v41 = vpop.permute.xlu2 %1020 }
 0x1f4   : > { %1380 = vmatmul.bf16.gmra.mxu0 %v2811_v27 }
 0x1f7   : > { %1165 = vperm.xlu1 %2993, %v947_v31  }
 0x1f9   : > { %v3724_v33 = vpop.permute.xlu1 %1050  ;;  %v3726_v34 = vpop.permute.xlu0 %1045 }
 0x1fa   : > { %v3741_v47 = vpop.permute.xlu2 %1025 }
 0x1ff   : > { %1175 = vperm.xlu1 %2993, %v949_v35  }
 0x201   : > { %v1346_v37 = vpop.f32.mrf.mxu0  ;;  %v1396_v38 = vpop.f32.mrf.mxu1 }
 0x202   : > { %v3730_v39 = vpop.permute.xlu1 %1000  ;;  %v3732_v40 = vpop.permute.xlu0 %1015  ;;  %v1347_v60 = vadd.f32 %v1346_v37, %v956_v25 }
 0x203   : > { %v1066_v55 = vpop.permute.xlu2 %1065 }
 0x204   : > { %1385 = vmatmul.bf16.gmra.mxu0 %v2812_v36 }
 0x207   : > { %1135 = vperm.xlu1 %2993, %v941_v42  }
 0x209   : > { %v1348_v43 = vpop.f32.mrf.mxu0  ;;  %v1398_v44 = vpop.f32.mrf.mxu1 }
 0x20a   : > { %v3737_v45 = vpop.permute.xlu1 %1040  ;;  %v3739_v46 = vpop.permute.xlu0 %1035  ;;  %v1349_v9 = vadd.f32 %v1348_v43, %v961_v30 }
 0x20b   : > { %v1091_v63 = vpop.permute.xlu2 %1090 }
 0x211   : > { %v1351_v49 = vpop.f32.mrf.mxu0  ;;  %v1401_v50 = vpop.f32.mrf.mxu1 }
 0x212   : > { %v991_v51 = vpop.permute.xlu1 %990  ;;  %v3744_v52 = vpop.permute.xlu0 %1005  ;;  %v1402_v61 = vadd.f32 %v1401_v50, %v1066_v55  ;;  %v1352_v26 = vadd.f32 %v1351_v49, %v3715_v24 }
 0x213   : > { %v3750_v17 = vpop.permute.xlu2 %1105 }
 0x214   : > { %1390 = vmatmul.bf16.gmra.mxu0 %v2813_v48  ;;  %v1604_v4 = vpack.c.bf16 %v1402_v61, %v1402_v61 }
 0x216   : > { %v1653_v10 = vunpack.c.l.b16 %v1604_v4 }
 0x219   : > { %v1353_v53 = vpop.f32.mrf.mxu0  ;;  %v1403_v54 = vpop.f32.mrf.mxu1 }
 0x21a   : > { %v3746_v56 = vpop.permute.xlu1 %1030  ;;  %v3748_v57 = vpop.permute.xlu0 %1010  ;;  %v1354_v43 = vadd.f32 %v1353_v53, %v3719_v29 }
 0x21b   : > { %v1081_v42 = vpop.permute.xlu2 %1080 }
 0x221   : > { %v1356_v58 = vpop.f32.mrf.mxu0  ;;  %v1406_v59 = vpop.f32.mrf.mxu1 }
 0x222   : > { %v1357_v62 = vadd.f32 %v1356_v58, %v976_v19  ;;  %v1086_v1 = vpop.permute.xlu1 %1085  ;;  %v1071_v2 = vpop.permute.xlu0 %1070 }
 0x223   : > { %v1404_v5 = vadd.f32 %v1403_v54, %v1071_v2 }
 0x224   : > { %v2995_v0 = vpack.i.bf16 %v1357_v62, %v1347_v60 }
 0x225   : > { %v1605_v6 = vpack.c.bf16 %v1404_v5, %v1404_v5 }
 0x226   : > { %2996 = vxpose.xlu2.b32.start [1/4] (short) (narrow) %v2995_v0, 8 }
 0x227   : > { %v1654_v11 = vunpack.c.l.b16 %v1605_v6 }
 0x229   : > { %v1358_v7 = vpop.f32.mrf.mxu0  ;;  %v1408_v8 = vpop.f32.mrf.mxu1  ;;  %v1656_v14 = vpack.c.b16 %v1654_v11, %v1653_v10 }
 0x22a   : > { %v1359_v12 = vadd.f32 %v1358_v7, %v981_v28  ;;  %v1061_v15 = vpop.permute.xlu1 %1060  ;;  %v1056_v16 = vpop.permute.xlu0 %1055  ;;  %v1409_v50 = vadd.f32 %v1408_v8, %v1081_v42 }
 0x22b   : > { %v1399_v18 = vadd.f32 %v1398_v44, %v1061_v15  ;;  %v1397_v19 = vadd.f32 %v1396_v38, %v1056_v16  ;;  %1668 = vmatpush.bf16.msrb.mxu2 %v1656_v14 }
 0x22c   : > { %v2997_v13 = vpack.i.bf16 %v1359_v12, %v1349_v9 }
 0x22d   : > { %v1603_v20 = vpack.c.bf16 %v1399_v18, %v1399_v18  ;;  %v1602_v21 = vpack.c.bf16 %v1397_v19, %v1397_v19  ;;  %v1416_v18 = vpop.f32.mrf.mxu2 }
 0x22e   : > { %2998 = vxpose.xlu2.b32.cont [2/4] (short) (narrow) %v2997_v13, 8 }
 0x22f   : > { %v1652_v27 = vunpack.c.l.b16 %v1603_v20  ;;  %v1651_v30 = vunpack.c.l.b16 %v1602_v21 }
 0x231   : > { %v1361_v23 = vpop.f32.mrf.mxu0  ;;  %v1411_v25 = vpop.f32.mrf.mxu1  ;;  %v1655_v35 = vpack.c.b16 %v1652_v27, %v1651_v30 }
 0x232   : > { %v1362_v28 = vadd.f32 %v1361_v23, %v3722_v32  ;;  %v1076_v36 = vpop.permute.xlu1 %1075  ;;  %v1412_v37 = vadd.f32 %v1411_v25, %v1086_v1  ;;  %v1607_v32 = vpack.c.bf16 %v1409_v50, %v1409_v50  ;;  %v1111_v23 = vpop.permute.xlu0 %1110 }
 0x233   : > { %1669 = vmatpush.bf16.msrb.mxu2 %v1655_v35  ;;  %v1407_v38 = vadd.f32 %v1406_v59, %v1076_v36 }
 0x234   : > { %v2999_v31 = vpack.i.bf16 %v1362_v28, %v1352_v26  ;;  %v1608_v54 = vpack.c.bf16 %v1412_v37, %v1412_v37  ;;  %v1680_v4 = vunpack.c.l.b16 %v1607_v32 }
 0x235   : > { %v1606_v49 = vpack.c.bf16 %v1407_v38, %v1407_v38  ;;  %v1418_v20 = vpop.f32.mrf.mxu2 }
 0x236   : > { %3000 = vxpose.xlu2.b32.cont [3/4] (short) (narrow) %v2999_v31, 8  ;;  %v1681_v61 = vunpack.c.l.b16 %v1608_v54 }
 0x237   : > { %v1679_v0 = vunpack.c.l.b16 %v1606_v49 }
 0x239   : > { %v1363_v44 = vpop.f32.mrf.mxu0  ;;  %v1413_v48 = vpop.f32.mrf.mxu1  ;;  %v1683_v59 = vpack.c.b16 %v1680_v4, %v1679_v0 }
 0x23a   : > { %v1364_v55 = vadd.f32 %v1363_v44, %v991_v51  ;;  %v1414_v24 = vadd.f32 %v1413_v48, %v1091_v63  ;;  %v1101_v28 = vpop.permute.xlu1 %1100 }
 0x23c   : > { %v3001_v58 = vpack.i.bf16 %v1364_v55, %v1354_v43  ;;  %v1609_v60 = vpack.c.bf16 %v1414_v24, %v1414_v24  ;;  %v1419_v43 = vadd.f32 %v1418_v20, %v1101_v28 }
 0x23d   : > { %v1421_v21 = vpop.f32.mrf.mxu2 }
 0x23e   : > { %v1682_v62 = vunpack.c.l.b16 %v1609_v60  ;;  %3002 = vxpose.xlu2.b32.end [4/4] (short) (narrow) %v3001_v58, 8  ;;  %v1422_v36 = vadd.f32 %v1421_v21, %v3750_v17  ;;  %v1611_v49 = vpack.c.bf16 %v1419_v43, %v1419_v43  ;;  %v943_v17 = vld [vmem:[%s3620_s25 + $0x130] sm:$0xff] }
 0x240   : > { %v1684_v1 = vpack.c.b16 %v1682_v62, %v1681_v61  ;;  %v1612_v50 = vpack.c.bf16 %v1422_v36, %v1422_v36  ;;  %v1708_v61 = vunpack.c.l.b16 %v1611_v49 }
 0x241   : > { %v1366_v2 = vpop.f32.mrf.mxu0 }
 0x242   : > { %1696 = vmatpush.bf16.msrb.mxu3 %v1684_v1  ;;  %v1367_v51 = vadd.f32 %v1366_v2, %v3712_v22 }
 0x245   : > { %v1423_v26 = vpop.f32.mrf.mxu2 }
 0x246   : > { %1697 = vmatpush.bf16.msrb.mxu3 %v1683_v59  ;;  %v1424_v27 = vadd.f32 %v1423_v26, %v1111_v23  ;;  %v3793_v26 = vld [vmem:[%s4045_s16] ss:$0 sm:$0xff] }
 0x248   : > { %v1613_v38 = vpack.c.bf16 %v1424_v27, %v1424_v27 }
 0x249   : > { %v1368_v29 = vpop.f32.mrf.mxu0 }
 0x24a   : > { %v1369_v9 = vadd.f32 %v1368_v29, %v3730_v39  ;;  %v1710_v24 = vunpack.c.l.b16 %v1613_v38 }
 0x251   : > { %v1371_v53 = vpop.f32.mrf.mxu0 }
 0x252   : > { %v1372_v13 = vadd.f32 %v1371_v53, %v3744_v52  ;;  %v939_v53 = vld [vmem:[%s3620_s25 + $0x110] sm:$0xff] }
 0x259   : > { %v1373_v5 = vpop.f32.mrf.mxu0 }
 0x25a   : > { %v1374_v22 = vadd.f32 %v1373_v5, %v3748_v57  ;;  %v1096_v57 = vpop.permute.xlu0 %1095  ;;  %v3772_v5 = vpop.f32.mrf.mxu3 }
 0x261   : > { %v1376_v6 = vpop.f32.mrf.mxu0 }
 0x262   : > { %v1377_v63 = vadd.f32 %v1376_v6, %v3732_v40  ;;  %v944_v6 = vld [vmem:[%s3620_s25 + $0x138] sm:$0xff] }
 0x264   : > { %v3008_v7 = vpack.i.bf16 %v1377_v63, %v1367_v51  ;;  %v3775_v51 = vpop.f32.mrf.mxu3  ;;  %v948_v63 = vld [vmem:[%s3620_s25 + $0x158] sm:$0xff] }
 0x266   : > { %3009 = vxpose.xlu0.b32.start [1/4] (short) (narrow) %v3008_v7, 8  ;;  %v950_v7 = vld [vmem:[%s3620_s25 + $0x168] sm:$0xff] }
 0x269   : > { %v1378_v8 = vpop.f32.mrf.mxu0 }
 0x26a   : > { %v1379_v10 = vadd.f32 %v1378_v8, %v3734_v41 }
 0x26c   : > { %v3010_v11 = vpack.i.bf16 %v1379_v10, %v1369_v9  ;;  %v1441_v8 = vpop.f32.mrf.mxu3  ;;  %v945_v9 = vld [vmem:[%s3620_s25 + $0x140] sm:$0xff] }
 0x26e   : > { %3011 = vxpose.xlu0.b32.cont [2/4] (short) (narrow) %v3010_v11, 8 }
 0x271   : > { %v1381_v12 = vpop.f32.mrf.mxu0 }
 0x272   : > { %v1382_v14 = vadd.f32 %v1381_v12, %v3741_v47 }
 0x274   : > { %v3012_v15 = vpack.i.bf16 %v1382_v14, %v1372_v13  ;;  %v1443_v13 = vpop.f32.mrf.mxu3 }
 0x276   : > { %3013 = vxpose.xlu0.b32.cont [3/4] (short) (narrow) %v3012_v15, 8 }
 0x279   : > { %v1383_v16 = vpop.f32.mrf.mxu0 }
 0x27a   : > { %v1384_v40 = vadd.f32 %v1383_v16, %v3746_v56 }
 0x27c   : > { %v3014_v19 = vpack.i.bf16 %v1384_v40, %v1374_v22  ;;  %v3782_v16 = vpop.f32.mrf.mxu3  ;;  %v1426_v22 = vpop.f32.mrf.mxu2 }
 0x27e   : > { %3015 = vxpose.xlu0.b32.end [4/4] (short) (narrow) %v3014_v19, 8 }
 0x281   : > { %v1386_v39 = vpop.f32.mrf.mxu0 }
 0x282   : > { %v1387_v56 = vadd.f32 %v1386_v39, %v3739_v46  ;;  %v1131_v39 = vpop.permute.xlu1 %1130 }
 0x284   : > { %v1598_v44 = vpack.c.bf16 %v1387_v56, %v1387_v56  ;;  %v3784_v40 = vpop.f32.mrf.mxu3 }
 0x286   : > { %v1622_v58 = vunpack.c.l.b16 %v1598_v44 }
 0x289   : > { %v1388_v41 = vpop.f32.mrf.mxu0 }
 0x28a   : > { %v1389_v47 = vadd.f32 %v1388_v41, %v3737_v45  ;;  %v1116_v21 = vpop.permute.xlu1 %1115 }
 0x28c   : > { %v1599_v37 = vpack.c.bf16 %v1389_v47, %v1389_v47  ;;  %v1451_v19 = vpop.f32.mrf.mxu3 }
 0x28e   : > { %v1623_v54 = vunpack.c.l.b16 %v1599_v37 }
 0x290   : > { %v1626_v60 = vpack.c.b16 %v1623_v54, %v1622_v58 }
 0x291   : > { %v1391_v25 = vpop.f32.mrf.mxu0 }
 0x292   : > { %v1392_v52 = vadd.f32 %v1391_v25, %v3726_v34  ;;  %v1417_v34 = vadd.f32 %v1416_v18, %v1096_v57  ;;  %v1428_v18 = vpop.f32.mrf.mxu2  ;;  %v1121_v27 = vpop.permute.xlu1 %1120 }
 0x294   : > { %v1600_v31 = vpack.c.bf16 %v1392_v52, %v1392_v52  ;;  %v1610_v46 = vpack.c.bf16 %v1417_v34, %v1417_v34  ;;  %v1453_v41 = vpop.f32.mrf.mxu3 }
 0x296   : > { %v1624_v48 = vunpack.c.l.b16 %v1600_v31  ;;  %v1707_v62 = vunpack.c.l.b16 %v1610_v46 }
 0x298   : > { %v1711_v0 = vpack.c.b16 %v1708_v61, %v1707_v62 }
 0x299   : > { %v1393_v30 = vpop.f32.mrf.mxu0 }
 0x29a   : > { %v1394_v35 = vadd.f32 %v1393_v30, %v3724_v33  ;;  %v1709_v33 = vunpack.c.l.b16 %v1612_v50  ;;  %v1431_v20 = vpop.f32.mrf.mxu2  ;;  %v1186_v36 = vpop.permute.xlu1 %1185 }
 0x29c   : > { %v1601_v42 = vpack.c.bf16 %v1394_v35, %v1394_v35  ;;  %v1712_v32 = vpack.c.b16 %v1710_v24, %v1709_v33  ;;  %v3786_v25 = vpop.f32.mrf.mxu3  ;;  %v1427_v24 = vadd.f32 %v1426_v22, %v1116_v21 }
 0x29e   : > { %v1625_v45 = vunpack.c.l.b16 %v1601_v42  ;;  %v1780_v61 = vpack.c.bf16 %v1427_v24, %v1427_v24  ;;  %v942_v24 = vld [vmem:[%s3620_s25 + $0x128] sm:$0xff] }
 0x2a0   : > { %v1627_v55 = vpack.c.b16 %v1625_v45, %v1624_v48  ;;  %v1429_v45 = vadd.f32 %v1428_v18, %v1121_v27 }
 0x2a2   : > { %1640 = vmatpush.bf16.msrb.mxu1 %v1627_v55  ;;  %v1433_v23 = vpop.f32.mrf.mxu2  ;;  %v1191_v43 = vpop.permute.xlu1 %1190  ;;  %v1781_v33 = vpack.c.bf16 %v1429_v45, %v1429_v45 }
 0x2a3   : > { %v1434_v38 = vadd.f32 %v1433_v23, %v1131_v39 }
 0x2a4   : > { %v3798_v28 = vpop.f32.mrf.mxu3 }
 0x2a5   : > { %v1783_v48 = vpack.c.bf16 %v1434_v38, %v1434_v38 }
 0x2a6   : > { %1641 = vmatpush.bf16.msrb.mxu1 %v1626_v60 }
 0x2a7   : > { %1145 = vperm.xlu2 %2994, %v943_v17   ;;  %v1803_v58 = vunpack.c.l.b16 %v1783_v48 }
 0x2aa   : > { %1724 = vmatpush.bf16.msra.mxu1 %v1712_v32 }
 0x2ac   : > { %v1461_v42 = vpop.f32.mrf.mxu3 }
 0x2ad   : > { %v1462_v46 = vadd.f32 %v1461_v42, %v1186_v36 }
 0x2ae   : > { %1725 = vmatpush.bf16.msra.mxu1 %v1711_v0 }
 0x2af   : > { %v1794_v0 = vpack.c.bf16 %v1462_v46, %v1462_v46 }
 0x2b4   : > { %v1463_v34 = vpop.f32.mrf.mxu3 }
 0x2b5   : > { %v1464_v54 = vadd.f32 %v1463_v34, %v1191_v43 }
 0x2b7   : > { %v1795_v32 = vpack.c.bf16 %v1464_v54, %v1464_v54 }
 0x2bf   : > { %v3003_v1 = vpop.trf.xlu2 }
 0x2c0   : > { %v3007_v2 = vunpack.i.h.bf16 %v3003_v1  ;;  %v3004_v4 = vunpack.i.l.bf16 %v3003_v1  ;;  %v1166_v1 = vpop.permute.xlu1 %1165 }
 0x2c2   : > { %v1595_v59 = vpack.c.bf16 %v3007_v2, %v3007_v2  ;;  %v1594_v29 = vpack.c.bf16 %v3004_v4, %v3004_v4  ;;  %v1801_v4 = vunpack.c.l.b16 %v1781_v33 }
 0x2c4   : > { %2691 = vmatmul.msk.bf16.vlgmr.msrb.gmra.mxu2 %vm1630_vm4, %v1595_v59  ;;  %2690 = vmatmul.msk.bf16.vlgmr.msrb.gmra.mxu1 %vm1630_vm4, %v1594_v29 }
 0x2c8   : > { %v1176_v21 = vpop.permute.xlu1 %1175 }
 0x2ec   : > { %1125 = vperm.xlu0 %2992, %v939_v53  }
 0x2f4   : > { %1150 = vperm.xlu0 %2992, %v944_v6   ;;  %v1899_v6 = vunpack.c.l.b16 %v1795_v32 }
 0x2fc   : > { %1170 = vperm.xlu0 %2992, %v948_v63   ;;  %v1800_v63 = vunpack.c.l.b16 %v1780_v61 }
 0x301   : > { %v1146_v55 = vpop.permute.xlu2 %1145 }
 0x302   : > { %v1442_v60 = vadd.f32 %v1441_v8, %v1146_v55 }
 0x304   : > { %1180 = vperm.xlu0 %2992, %v950_v7   ;;  %v1786_v59 = vpack.c.bf16 %v1442_v60, %v1442_v60 }
 0x306   : > { %v1834_v8 = vunpack.c.l.b16 %v1786_v59 }
 0x30a   : > { %v3016_v10 = vpop.trf.xlu0 }
 0x30b   : > { %v3020_v11 = vunpack.i.h.bf16 %v3016_v10  ;;  %v3017_v12 = vunpack.i.l.bf16 %v3016_v10  ;;  %v1804_v10 = vpack.c.b16 %v1801_v4, %v1800_v63 }
 0x30c   : > { %1155 = vperm.xlu0 %2992, %v945_v9   ;;  %v1898_v9 = vunpack.c.l.b16 %v1794_v0 }
 0x30d   : > { %v1597_v14 = vpack.c.bf16 %v3020_v11, %v3020_v11  ;;  %v1596_v15 = vpack.c.bf16 %v3017_v12, %v3017_v12  ;;  %v1452_v11 = vadd.f32 %v1451_v19, %v1166_v1  ;;  %v1457_v19 = vadd.f32 %v3786_v25, %v1176_v21  ;;  %v946_v1 = vld [vmem:[%s3620_s25 + $0x148] sm:$0xff] }
 0x30f   : > { %2692 = vmatmul.msk.bf16.vlgmr.msrb.gmra.mxu3 %vm1630_vm4, %v1596_v15  ;;  %2693 = vmatmul.msk.bf16.vlgmr.msra.gmra.mxu1 %vm1630_vm4, %v1597_v14  ;;  %v1901_v14 = vpack.c.b16 %v1899_v6, %v1898_v9  ;;  %v1790_v18 = vpack.c.bf16 %v1452_v11, %v1452_v11 }
 0x311   : > { %v1909_v23 = vsel %vm1731_vm5, %v1901_v14, 0 }
 0x341   : > { %v1643_v52 = vpop.f32.mrf.mxu1 }
 0x342   : > { %v3803_v31 = vadd.f32 %v3793_v26, %v1643_v52 }
 0x344   : > { %v1732_v37 = vsel %vm1731_vm5, %v3803_v31, -inf }
 0x347   : > { %v1671_v47 = vpop.f32.mrf.mxu2 }
 0x348   : > { %v3796_v30 = vadd.f32 %v3793_v26, %v1671_v47  ;;  %v1866_v47 = vunpack.c.l.b16 %v1790_v18 }
 0x349   : > { %v1645_v57 = vpop.f32.mrf.mxu1 }
 0x34a   : > { %v1735_v56 = vsel %vm1731_vm5, %v3796_v30, -inf }
 0x34b   : > { %1736 = vmax.xlane.f32.xlu1 %v1735_v56 }
 0x34f   : > { %v1673_v35 = vpop.f32.mrf.mxu2 }
 0x350   : > { %v1792_v35 = vpack.c.bf16 %v1457_v19, %v1457_v19 }
 0x352   : > { %v1896_v42 = vunpack.c.l.b16 %v1792_v35 }
 0x353   : > { %1733 = vmax.xlane.f32.xlu1 %v1732_v37 }
 0x35e   : > { %v1126_v44 = vpop.permute.xlu0 %1125 }
 0x35f   : > { %v1432_v50 = vadd.f32 %v1431_v20, %v1126_v44  ;;  %v1810_v20 = vsel %vm1731_vm5, %v1804_v10, 0 }
 0x361   : > { %v1782_v49 = vpack.c.bf16 %v1432_v50, %v1432_v50 }
 0x363   : > { %v1802_v17 = vunpack.c.l.b16 %v1782_v49  ;;  %v1136_v49 = vpop.permute.xlu1 %1135 }
 0x364   : > { %v1437_v6 = vadd.f32 %v3772_v5, %v1136_v49 }
 0x365   : > { %v1805_v62 = vpack.c.b16 %v1803_v58, %v1802_v17 }
 0x366   : > { %v1151_v2 = vpop.permute.xlu0 %1150  ;;  %v1784_v9 = vpack.c.bf16 %v1437_v6, %v1437_v6 }
 0x367   : > { %v1444_v29 = vadd.f32 %v1443_v13, %v1151_v2  ;;  %v1813_v53 = vsel %vm1731_vm5, %v1805_v62, 0 }
 0x368   : > { %1821 = vmatpush.bf16.xpose.msra.mxu2 %v1813_v53  ;;  %v1832_v14 = vunpack.c.l.b16 %v1784_v9 }
 0x369   : > { %v1787_v7 = vpack.c.bf16 %v1444_v29, %v1444_v29 }
 0x36b   : > { %v1835_v12 = vunpack.c.l.b16 %v1787_v7 }
 0x36d   : > { %v1837_v15 = vpack.c.b16 %v1835_v12, %v1834_v8 }
 0x36e   : > { %v1171_v22 = vpop.permute.xlu0 %1170 }
 0x36f   : > { %v1454_v39 = vadd.f32 %v1453_v41, %v1171_v22  ;;  %v1845_v13 = vsel %vm1731_vm5, %v1837_v15, 0 }
 0x370   : > { %1822 = vmatpush.bf16.xpose.msra.mxu2 %v1810_v20  ;;  %1853 = vmatpush.bf16.xpose.msra.mxu3 %v1845_v13 }
 0x371   : > { %v1791_v52 = vpack.c.bf16 %v1454_v39, %v1454_v39 }
 0x373   : > { %v1867_v27 = vunpack.c.l.b16 %v1791_v52 }
 0x375   : > { %v1869_v57 = vpack.c.b16 %v1867_v27, %v1866_v47 }
 0x376   : > { %v1181_v56 = vpop.permute.xlu0 %1180 }
 0x377   : > { %v1459_v41 = vadd.f32 %v3798_v28, %v1181_v56  ;;  %v1877_v36 = vsel %vm1731_vm5, %v1869_v57, 0 }
 0x378   : > { %1917 = vmatpush.bf16.xpose.msrb.mxu2 %v1909_v23  ;;  %1885 = vmatpush.bf16.xpose.msrb.mxu1 %v1877_v36 }
 0x379   : > { %v1793_v37 = vpack.c.bf16 %v1459_v41, %v1459_v41 }
 0x37b   : > { %v1897_v38 = vunpack.c.l.b16 %v1793_v37 }
 0x37d   : > { %v1900_v43 = vpack.c.b16 %v1897_v38, %v1896_v42  ;;  %v2831_v38 = vld [vmem:[%s3606_s12 + $0x18] sm:$0xff] }
 0x37e   : > { %v1156_v5 = vpop.permute.xlu0 %1155 }
 0x37f   : > { %v1906_v34 = vsel %vm1731_vm5, %v1900_v43, 0  ;;  %v1447_v19 = vadd.f32 %v3782_v16, %v1156_v5 }
 0x380   : > { %1918 = vmatpush.bf16.xpose.msrb.mxu2 %v1906_v34 }
 0x381   : > { %v1788_v57 = vpack.c.bf16 %v1447_v19, %v1447_v19  ;;  %v2837_v19 = vld [vmem:[%s3633_s20 + $0x8] sm:$0xff] }
 0x383   : > { %v1864_v41 = vunpack.c.l.b16 %v1788_v57  ;;  %v2851_v57 = vld [vmem:[%s3642_s17 + $0x38] sm:$0xff] }
 0x38c   : > { %v1727_v44 = vpop.f32.mrf.mxu1 }
 0x38d   : > { %v1728_v25 = vadd.f32 %v3793_v26, %v1727_v44 }
 0x38f   : > { %v1741_v48 = vsel %vm1731_vm5, %v1728_v25, -inf }
 0x390   : > { %1742 = vmax.xlane.f32.xlu1 %v1741_v48 }
 0x392   : > { %v1699_v45 = vpop.f32.mrf.mxu3 }
 0x393   : > { %v1700_v28 = vadd.f32 %v3793_v26, %v1699_v45 }
 0x394   : > { %v1729_v50 = vpop.f32.mrf.mxu1 }
 0x395   : > { %v1738_v54 = vsel %vm1731_vm5, %v1700_v28, -inf  ;;  %v2829_v50 = vld [vmem:[%s3606_s12 + $0x8] sm:$0xff] }
 0x396   : > { %1739 = vmax.xlane.f32.xlu2 %v1738_v54  ;;  %v2828_v54 = vld [vmem:[%s3606_s12] sm:$0xff] }
 0x39a   : > { %v1701_v55 = vpop.f32.mrf.mxu3 }
 0x39b   : > { %v2833_v55 = vld [vmem:[%s3606_s12 + $0x28] sm:$0xff] }
 0x3ae   : > { %1140 = vperm.xlu2 %2994, %v942_v24   ;;  %v2835_v24 = vld [vmem:[%s3606_s12 + $0x38] sm:$0xff] }
 0x3be   : > { %v1737_v46 = vpop.xlane.xlu1 %1736 }
 0x3bf   : > { %v1745_v58 = vsub.f32 %v3796_v30, %v1737_v46 }
 0x3c1   : > { %v1750_v33 = vmul.f32 1.442695, %v1745_v58 }
 0x3c3   : > { %3029 = vpow2.f32 %v1750_v33 }
 0x3c6   : > { %v1734_v60 = vpop.xlane.xlu1 %1733 }
 0x3c7   : > { %v1744_v17 = vsub.f32 %v3803_v31, %v1734_v60 }
 0x3c9   : > { %v3030_v32 = vpop.eup %3029  ;;  %v1748_v61 = vmul.f32 1.442695, %v1744_v17 }
 0x3ca   : > { %v1759_v26 = vsel %vm1731_vm5, %v3030_v32, 0.0 }
 0x3cb   : > { %3031 = vpow2.f32 %v1748_v61  ;;  %1760 = vadd.xlane.f32.xlu0 %v1759_v26  ;;  %v2834_v61 = vld [vmem:[%s3606_s12 + $0x30] sm:$0xff] }
 0x3d1   : > { %v3032_v62 = vpop.eup %3031 }
 0x3d2   : > { %v1756_v0 = vsel %vm1731_vm5, %v3032_v62, 0.0 }
 0x3d3   : > { %1757 = vadd.xlane.f32.xlu1 %v1756_v0 }
 0x3ec   : > { %1160 = vperm.xlu1 %2993, %v946_v1  }
 0x403   : > { %v1743_v2 = vpop.xlane.xlu1 %1742 }
 0x404   : > { %v1747_v4 = vsub.f32 %v1728_v25, %v1743_v2 }
 0x406   : > { %v1754_v30 = vmul.f32 1.442695, %v1747_v4 }
 0x408   : > { %3033 = vpow2.f32 %v1754_v30 }
 0x409   : > { %v1740_v59 = vpop.xlane.xlu2 %1739 }
 0x40a   : > { %v1746_v29 = vsub.f32 %v1700_v28, %v1740_v59  ;;  %v2830_v28 = vld [vmem:[%s3606_s12 + $0x10] sm:$0xff] }
 0x40c   : > { %v1752_v53 = vmul.f32 1.442695, %v1746_v29 }
 0x40e   : > { %v3034_v31 = vpop.eup %3033  ;;  %3035 = vpow2.f32 %v1752_v53 }
 0x40f   : > { %v1765_v63 = vsel %vm1731_vm5, %v3034_v31, 0.0 }
 0x410   : > { %1766 = vadd.xlane.f32.xlu2 %v1765_v63 }
 0x411   : > { %v1141_v7 = vpop.permute.xlu2 %1140 }
 0x412   : > { %v1439_v10 = vadd.f32 %v3775_v51, %v1141_v7 }
 0x414   : > { %v3036_v11 = vpop.eup %3035  ;;  %v1785_v8 = vpack.c.bf16 %v1439_v10, %v1439_v10 }
 0x415   : > { %v1762_v12 = vsel %vm1731_vm5, %v3036_v11, 0.0 }
 0x416   : > { %v1833_v15 = vunpack.c.l.b16 %v1785_v8  ;;  %1763 = vadd.xlane.f32.xlu1 %v1762_v12  ;;  %v3051_v8 = vld [vmem:[#allocation2] sm:$0xff] }
 0x418   : > { %v1836_v22 = vpack.c.b16 %v1833_v15, %v1832_v14 }
 0x41a   : > { %v1842_v18 = vsel %vm1731_vm5, %v1836_v22, 0  ;;  %v2843_v22 = vld [vmem:[%s3633_s20 + $0x38] sm:$0xff] }
 0x41b   : > { %1854 = vmatpush.bf16.xpose.msra.mxu3 %v1842_v18 }
 0x423   : > { %1965 = vmatpush.bf16.msrb.mxu3 %v2829_v50  ;;  %v2850_v50 = vld [vmem:[%s3642_s17 + $0x30] sm:$0xff] }
 0x427   : > { %1966 = vmatpush.bf16.msrb.mxu3 %v2828_v54  ;;  %v2849_v54 = vld [vmem:[%s3642_s17 + $0x28] sm:$0xff] }
 0x43e   : > { %v1761_v39 = vpop.xlane.xlu0 %1760 }
 0x43f   : > { %3037 = vrcp.f32 %v1761_v39 }
 0x445   : > { %v3038_v20 = vpop.eup %3037 }
 0x446   : > { %v1773_v13 = vmul.f32 %v3038_v20, %v3030_v32  ;;  %v1758_v21 = vpop.xlane.xlu1 %1757  ;;  %v2832_v32 = vld [vmem:[%s3606_s12 + $0x20] sm:$0xff]  ;;  %s4046_s12 = sld [smem:[#allocation37_spill]] }
 0x447   : > { %3039 = vrcp.f32 %v1758_v21  ;;  %v2842_v21 = vld [vmem:[%s3633_s20 + $0x30] sm:$0xff] }
 0x448   : > { %v1777_v23 = vpack.c.bf16 %v1773_v13, %v1773_v13 }
 0x44a   : > { %2695 = vmatmul.msk.bf16.vlgmr.msra.gmra.mxu3 %vm1731_vm5, %v1777_v23  ;;  %v2841_v23 = vld [vmem:[%s3633_s20 + $0x28] sm:$0xff] }
 0x44b   : > { %2049 = vmatpush.bf16.msra.mxu3 %v2835_v24  ;;  %v2847_v24 = vld [vmem:[%s3642_s17 + $0x18] sm:$0xff] }
 0x44c   : > { %s4047_s24 = scalar_lea.vmem %s4046_s12, %s3592_s2 }
 0x44d   : > { %v3040_v51 = vpop.eup %3039  ;;  %v3022_v9 = vld [vmem:[%s4047_s24] ss:$0 sm:$0xff] }
 0x44e   : > { %v1772_v52 = vmul.f32 %v3040_v51, %v3032_v62  ;;  %v2840_v51 = vld [vmem:[%s3633_s20 + $0x20] sm:$0xff] }
 0x44f   : > { %2050 = vmatpush.bf16.msra.mxu3 %v2834_v61 }
 0x450   : > { %v1776_v47 = vpack.c.bf16 %v1772_v52, %v1772_v52  ;;  %v2839_v52 = vld [vmem:[%s3633_s20 + $0x18] sm:$0xff] }
 0x452   : > { %2694 = vmatmul.msk.bf16.vlgmr.msra.gmra.mxu2 %vm1731_vm5, %v1776_v47  ;;  %v2838_v47 = vld [vmem:[%s3633_s20 + $0x10] sm:$0xff] }
 0x453   : > { %2021 = vmatpush.bf16.msra.mxu2 %v2833_v55  ;;  %v2848_v55 = vld [vmem:[%s3642_s17 + $0x20] sm:$0xff] }
 0x457   : > { %2022 = vmatpush.bf16.msra.mxu2 %v2832_v32 }
 0x45e   : > { %v1161_v27 = vpop.permute.xlu1 %1160 }
 0x45f   : > { %v1449_v56 = vadd.f32 %v3784_v40, %v1161_v27  ;;  %v2836_v27 = vld [vmem:[%s3633_s20] sm:$0xff] }
 0x461   : > { %v1789_v35 = vpack.c.bf16 %v1449_v56, %v1449_v56 }
 0x463   : > { %v1865_v36 = vunpack.c.l.b16 %v1789_v35 }
 0x465   : > { %v1868_v37 = vpack.c.b16 %v1865_v36, %v1864_v41 }
 0x467   : > { %v1874_v42 = vsel %vm1731_vm5, %v1868_v37, 0 }
 0x468   : > { %1886 = vmatpush.bf16.xpose.msrb.mxu1 %v1874_v42 }
 0x470   : > { %1993 = vmatpush.bf16.msra.mxu1 %v2831_v38 }
 0x474   : > { %1994 = vmatpush.bf16.msra.mxu1 %v2830_v28 }
 0x483   : > { %v1767_v43 = vpop.xlane.xlu2 %1766 }
 0x484   : > { %3041 = vrcp.f32 %v1767_v43 }
 0x489   : > { %v1764_v34 = vpop.xlane.xlu1 %1763 }
 0x48a   : > { %v3042_v16 = vpop.eup %3041  ;;  %3043 = vrcp.f32 %v1764_v34 }
 0x48b   : > { %v1775_v40 = vmul.f32 %v3042_v16, %v3034_v31  ;;  %v3023_v16 = vld [vmem:[%s4049_s3] ss:$0 sm:$0xff] }
 0x48d   : > { %v1779_v44 = vpack.c.bf16 %v1775_v40, %v1775_v40 }
 0x48f   : > { %2697 = vmatmul.msk.bf16.vlgmr.msrb.gmra.mxu2 %vm1731_vm5, %v1779_v44 }
 0x490   : > { %v3044_v25 = vpop.eup %3043  ;;  %2256 = vmatpush.bf16.msrb.mxu2 %v2851_v57 }
 0x491   : > { %v1774_v48 = vmul.f32 %v3044_v25, %v3036_v11  ;;  %v3024_v25 = vld [vmem:[%s4051_s29] ss:$0 sm:$0xff] }
 0x493   : > { %v1778_v45 = vpack.c.bf16 %v1774_v48, %v1774_v48 }
 0x494   : > { %2257 = vmatpush.bf16.msrb.mxu2 %v2850_v50 }
 0x495   : > { %2696 = vmatmul.msk.bf16.vlgmr.msrb.gmra.mxu1 %vm1731_vm5, %v1778_v45 }
 0x496   : > { %2165 = vmatpush.bf16.msrb.mxu1 %v2843_v22 }
 0x498   : > { %2258 = vmatpush.bf16.msrb.mxu2 %v2849_v54 }
 0x49a   : > { %2166 = vmatpush.bf16.msrb.mxu1 %v2842_v21 }
 0x49c   : > { %2259 = vmatpush.bf16.msrb.mxu2 %v2848_v55 }
 0x49e   : > { %2167 = vmatpush.bf16.msrb.mxu1 %v2841_v23 }
 0x4a0   : > { %2260 = vmatpush.bf16.msrb.mxu2 %v2847_v24 }
 0x4a2   : > { %2168 = vmatpush.bf16.msrb.mxu1 %v2840_v51  ;;  %v3028_v51 = vld [vmem:[%s3580_s13] ss:$0 sm:$0xff] }
 0x4a6   : > { %2169 = vmatpush.bf16.msrb.mxu1 %v2839_v52 }
 0x4aa   : > { %2170 = vmatpush.bf16.msrb.mxu1 %v2838_v47 }
 0x4ae   : > { %2171 = vmatpush.bf16.msrb.mxu1 %v2837_v19 }
 0x4b2   : > { %2172 = vmatpush.bf16.msrb.mxu1 %v2836_v27 }
 0x4cd   : > { %v1856_v49 = vpop.f32.mrf.mxu3 }
 0x4ce   : > { %v1925_v46 = vpack.c.bf16 %v1856_v49, %v1856_v49  ;;  %v2846_v49 = vld [vmem:[%s3642_s17 + $0x10] sm:$0xff] }
 0x4cf   : > { %2261 = vmatpush.bf16.msrb.mxu2 %v2846_v49 }
 0x4d0   : > { %2715 = vmatmul.msk.bf16.vlgmr.msra.gmra.mxu1 %vm1630_vm4, %v1925_v46  ;;  %v2845_v46 = vld [vmem:[%s3642_s17 + $0x8] sm:$0xff] }
 0x4d3   : > { %2262 = vmatpush.bf16.msrb.mxu2 %v2845_v46 }
 0x4d5   : > { %v1824_v58 = vpop.f32.mrf.mxu2  ;;  %v1858_v33 = vpop.f32.mrf.mxu3 }
 0x4d6   : > { %v1924_v60 = vpack.c.bf16 %v1824_v58, %v1824_v58  ;;  %v2844_v58 = vld [vmem:[%s3642_s17] sm:$0xff] }
 0x4d7   : > { %2263 = vmatpush.bf16.msrb.mxu2 %v2844_v58  ;;  %v3025_v33 = vld [vmem:[%s800_s30] ss:$0 sm:$0xff] }
 0x4d8   : > { %2706 = vmatmul.msk.bf16.vlgmr.msrb.gmra.mxu3 %vm1630_vm4, %v1924_v60 }
 0x4dd   : > { %v1826_v17 = vpop.f32.mrf.mxu2 }
 0x512   : > { %v1888_v26 = vpop.f32.mrf.mxu1  ;;  %v1920_v62 = vpop.f32.mrf.mxu2 }
 0x513   : > { %v1926_v0 = vpack.c.bf16 %v1888_v26, %v1888_v26  ;;  %v1927_v1 = vpack.c.bf16 %v1920_v62, %v1920_v62 }
 0x515   : > { %2724 = vmatmul.msk.bf16.vlgmr.msra.gmra.mxu2 %vm1630_vm4, %v1926_v0  ;;  %2733 = vmatmul.msk.bf16.vlgmr.msra.gmra.mxu3 %vm1630_vm4, %v1927_v1 }
 0x51a   : > { %v1890_v2 = vpop.f32.mrf.mxu1  ;;  %v1922_v4 = vpop.f32.mrf.mxu2 }
 0x54d   : > { %v1996_v30 = vpop.f32.mrf.mxu1 }
 0x555   : > { %v1998_v59 = vpop.f32.mrf.mxu1 }
 0x55b   : > { %v1968_v29 = vpop.f32.mrf.mxu3 }
 0x55c   : > { %v2056_v31 = vadd.f32 %v1996_v30, %v1968_v29 }
 0x563   : > { %v1970_v53 = vpop.f32.mrf.mxu3 }
 0x564   : > { %v3026_v53 = vld [vmem:[%s808_s9] ss:$0 sm:$0xff] }
 0x598   : > { %v2024_v6 = vpop.f32.mrf.mxu2  ;;  %v2052_v63 = vpop.f32.mrf.mxu3 }
 0x599   : > { %v2057_v7 = vadd.f32 %v2056_v31, %v2024_v6 }
 0x59b   : > { %v2058_v10 = vadd.f32 %v2057_v7, %v2052_v63 }
 0x59d   : > { %v2063_v11 = vadd.f32 %v3022_v9, %v2058_v10 }
 0x59f   : > { %v2064_v12 = vadd.f32 %v3051_v8, %v2063_v11 }
 0x5a0   : > { %v2026_v14 = vpop.f32.mrf.mxu2  ;;  %v2054_v15 = vpop.f32.mrf.mxu3 }
 0x5a1   : > { %2067 = vadd.xlane.f32.xlu2 %v2064_v12 }
 0x614   : > { %v2068_v18 = vpop.xlane.xlu2 %2067 }
 0x615   : > { %v2069_v5 = vmul.f32 0.03125, %v2068_v18 }
 0x617   : > { %v2070_v39 = vsub.f32 %v2064_v12, %v2069_v5 }
 0x619   : > { %v2071_v20 = vmul.f32 %v3600_v3, %v2070_v39 }
 0x61b   : > { %v2072_v13 = vmul.f32 %v2071_v20, %v2071_v20 }
 0x61d   : > { %2073 = vadd.xlane.f32.xlu0 %v2072_v13 }
 0x690   : > { %v2074_v56 = vpop.xlane.xlu0 %2073 }
 0x691   : > { %v2075_v35 = vmul.f32 0.03125, %v2074_v56 }
 0x693   : > { %v2076_v41 = vadd.f32 1e-05, %v2075_v35 }
 0x695   : > { %3045 = vrsqrt.f32 %v2076_v41  ;;  %vm2083_vm7 = vweird.f32 %v2076_v41 }
 0x69b   : > { %v3046_v36 = vpop.eup %3045 }
 0x69c   : > { %v2078_v37 = vmul.f32 %v3046_v36, %v2076_v41  ;;  %vm2084_vm6 = vweird.f32 %v3046_v36 }
 0x69d   : > { %vm2085_vm8 = vmor %vm2083_vm7, %vm2084_vm6 }
 0x69e   : > { %v2079_v42 = vmul.f32 %v3046_v36, %v2078_v37 }
 0x6a0   : > { %v2080_v38 = vmul.f32 0.5, %v2079_v42 }
 0x6a2   : > { %v2081_v43 = vsub.f32 1.5, %v2080_v38 }
 0x6a4   : > { %v2082_v34 = vmul.f32 %v3046_v36, %v2081_v43 }
 0x6a6   : > { %v2086_v40 = vsel %vm2085_vm8, %v3046_v36, %v2082_v34 }
 0x6a7   : > { %v2087_v44 = vmul.f32 %v2086_v40, %v2071_v20 }
 0x6a9   : > { %v2091_v48 = vmul.f32 %v3023_v16, %v2087_v44 }
 0x6ab   : > { %v2095_v45 = vadd.f32 %v3024_v25, %v2091_v48 }
 0x6ad   : > { %v2096_v28 = vpack.c.bf16 %v2095_v45, %v2095_v45 }
 0x6af   : > { %2173 = vmatmul.bf16.vlgmr.msrb.gmra.mxu1 %v2096_v28 }
 0x72c   : > { %v2174_v60 = vpop.f32.mrf.mxu1 }
 0x72d   : > { %v2175_v17 = vadd.f32 %v3025_v33, %v2174_v60 }
 0x72f   : > { %v2178_v32 = vmul.f32 %v2175_v17, %v2175_v17 }
 0x731   : > { %v2179_v61 = vmul.f32 %v2178_v32, %v2175_v17 }
 0x733   : > { %v2180_v26 = vmul.f32 0.044715, %v2179_v61 }
 0x734   : > { %v2176_v62 = vpop.f32.mrf.mxu1 }
 0x735   : > { %v2181_v0 = vadd.f32 %v2180_v26, %v2175_v17 }
 0x737   : > { %v2182_v1 = vmul.f32 0.7978846, %v2181_v0 }
 0x739   : > { %3047 = vtanh.f32 %v2182_v1 }
 0x73f   : > { %v3048_v2 = vpop.eup %3047 }
 0x740   : > { %v2184_v4 = vadd.f32 1.0, %v3048_v2 }
 0x742   : > { %v2185_v30 = vmul.f32 0.5, %v2184_v4 }
 0x744   : > { %v2186_v59 = vmul.f32 %v2185_v30, %v2175_v17 }
 0x746   : > { %v2187_v29 = vpack.c.bf16 %v2186_v59, %v2186_v59 }
 0x748   : > { %2264 = vmatmul.bf16.vlgmr.msrb.gmra.mxu2 %v2187_v29 }
 0x7cb   : > { %v2265_v31 = vpop.f32.mrf.mxu2 }
 0x7cc   : > { %v2266_v6 = vadd.f32 %v3026_v53, %v2265_v31 }
 0x7ce   : > { %v2269_v63 = vadd.f32 %v2266_v6, %v2095_v45 }
 0x7d0   : > { %2272 = vadd.xlane.f32.xlu1 %v2269_v63 }
 0x7d3   : > { %v2267_v7 = vpop.f32.mrf.mxu2 }
 0x843   : > { %v2273_v9 = vpop.xlane.xlu1 %2272 }
 0x844   : > { %v2274_v10 = vmul.f32 0.03125, %v2273_v9 }
 0x846   : > { %v2275_v11 = vsub.f32 %v2269_v63, %v2274_v10 }
 0x848   : > { %v2276_v8 = vmul.f32 %v3600_v3, %v2275_v11  ;;  %v3027_v3 = vld [vmem:[%s811_s28] ss:$0 sm:$0xff] }
 0x84a   : > { %v2277_v12 = vmul.f32 %v2276_v8, %v2276_v8 }
 0x84c   : > { %2278 = vadd.xlane.f32.xlu2 %v2277_v12 }
 0x8bf   : > { %v2279_v14 = vpop.xlane.xlu2 %2278 }
 0x8c0   : > { %v2280_v15 = vmul.f32 0.03125, %v2279_v14 }
 0x8c2   : > { %v2281_v22 = vadd.f32 1e-05, %v2280_v15 }
 0x8c4   : > { %3049 = vrsqrt.f32 %v2281_v22  ;;  %vm2288_vm10 = vweird.f32 %v2281_v22 }
 0x8ca   : > { %v3050_v18 = vpop.eup %3049 }
 0x8cb   : > { %v2283_v5 = vmul.f32 %v3050_v18, %v2281_v22  ;;  %vm2289_vm9 = vweird.f32 %v3050_v18 }
 0x8cc   : > { %vm2290_vm11 = vmor %vm2288_vm10, %vm2289_vm9 }
 0x8cd   : > { %v2284_v39 = vmul.f32 %v3050_v18, %v2283_v5 }
 0x8cf   : > { %v2285_v20 = vmul.f32 0.5, %v2284_v39 }
 0x8d1   : > { %v2286_v13 = vsub.f32 1.5, %v2285_v20 }
 0x8d3   : > { %v2287_v21 = vmul.f32 %v3050_v18, %v2286_v13 }
 0x8d5   : > { %v2291_v23 = vsel %vm2290_vm11, %v3050_v18, %v2287_v21 }
 0x8d6   : > { %v2292_v52 = vmul.f32 %v2291_v23, %v2276_v8 }
 0x8d8   : > { %v2296_v47 = vmul.f32 %v3027_v3, %v2292_v52  ;;  %2305 = sbr.rel (%p2798_p3) target bundleno = 2289 (0x8f1), region = 108 }
 0x8da   : > { %v2300_v19 = vadd.f32 %v3028_v51, %v2296_v47 }
 0x8dc   : > { %2301 = vst [vmem:[#allocation2] sm:$0xff] %v2300_v19 }
 0x8dd   : > { %v2306_v27 = vrot.slane %v2300_v19, 4  ;;  %v3310_v57 = vmov 8.0  }
 0x8de   : > { %3052 = vrcp.f32 %v3310_v57 }
 0x8df   : > { %v2307_v56 = vadd.f32 %v2306_v27, %v2300_v19 }
 0x8e1   : > { %v2308_v35 = vrot.slane %v2307_v56, 2 }
 0x8e3   : > { %v2309_v41 = vadd.f32 %v2308_v35, %v2307_v56 }
 0x8e4   : > { %v3053_v36 = vpop.eup %3052 }
 0x8e5   : > { %v2313_v37 = vmul.f32 8.0, %v3053_v36  ;;  %v2310_v42 = vrot.slane %v2309_v41, 1  ;;  %vm2317_vm12 = vweird.f32 %v3053_v36 }
 0x8e7   : > { %v2314_v38 = vsub.f32 1.0, %v2313_v37  ;;  %v2311_v34 = vadd.f32 %v2310_v42, %v2309_v41 }
 0x8e9   : > { %v2315_v43 = vmul.f32 %v3053_v36, %v2314_v38 }
 0x8eb   : > { %v2316_v16 = vadd.f32 %v3053_v36, %v2315_v43 }
 0x8ed   : > { %v2318_v40 = vsel %vm2317_vm12, %v3053_v36, %v2316_v16 }
 0x8ee   : > { %v2319_v44 = vmul.f32 %v2318_v40, %v2311_v34 }
 0x8f0   : > { %2320 = vst [vmem:[%s765_s4] sm:$0x1] %v2319_v44 }
 0x8f1 PF: > { %s4055_s27 = sld [smem:[#allocation21_spill]]  ;;  %s2332_s16 = sshll.u32 %s765_s4, 4  ;;  %s2333_s16 = int_to_ptr.vmem [resolvable:$true] %s2332_s16 }
 0x8f2   : > { %s4056_s2 = sld [smem:[#allocation46_spill]]  ;;  %s2322_s18 = scalar_lea.sflag [#allocation5], %s3565_s8 }
 0x8f8   : > { %s2330_s19 = scalar_lea.hbm %s4056_s2, %s4055_s27  ;;  %s3194_s15 = scalar_lea.hbm %s4056_s2, 2 }
 0x8f9   : > { %s2334_s25 = sshll.u32 %s2330_s19, 4  ;;  %s2335_s25 = int_to_ptr.hbm [resolvable:$true] %s2334_s25 }
 0x8fa   : > { %s3188_s12 = sshra.s32 %s2335_s25, 4  ;;  %s3189_s12 = int_to_ptr.hbm [resolvable:$true] %s3188_s12 }
 0x8fb   : > { %s3190_s24 = scalar_lea.hbm %s3189_s12, 1  ;;  %p3195_p10 = scmp.lt.s32.totalorder %s3189_s12, %s4056_s2 }
 0x8fc   : > { %p3191_p6 = scmp.ne.s32.totalorder %s3189_s12, %s3190_s24  ;;  %p3196_p11 = scmp.lt.s32.totalorder %s3194_s15, %s3190_s24 }
 0x8fe   : > { %p3192_p7 = pnand %p3191_p6, %p3492_p12  ;;  %p3197_p2 = por %p3196_p11, %p3195_p10 }
 0x900   : > { %p3193_p9 = pneg %p3192_p7 }
 0x902   : > { %p3198_p8 = pnand %p3197_p2, %p3193_p9 }
 0x904   : > { %3201 = shalt.err (!%p3198_p8)
}
 0x905   : > { %2869 = dma.vmem_to_hbm [thread:$0]  (%p3492_p12), %s2333_s16, 16, %s2335_s25, %s2322_s18  }
 0x906 PF: > { %s4058_s8 = sld [smem:[#allocation24_spill]] }
 0x907   : > { %s4059_s4 = sld [smem:[#allocation18_spill]] }
 0x90c   : > { %p2894_p5 = scmp.ge.s32.totalorder %s4058_s8, 2 }
 0x90d   : > { %s2346_s26 = sand.u32 1, %s4059_s4  }
 0x90e   : > { %p2886_p4 = pnand %p2894_p5, %p3502_p0  ;;  %s2347_s29 = scalar_lea.sflag [#allocation5], %s2346_s26 }
 0x910   : > { %p2887_p13 = pneg %p2886_p4 }
 0x912   : > { %3259 = dma.done.wait (%p2887_p13), %s2347_s29, 16  }
 0x913   : > { %3261 = vsyncadd (%p2887_p13), %s2347_s29, 4294967280  ;;  %s36_s0 = sadd.s32 1, %s4058_s8   ;;  %s4061_s21 = sld [smem:[#allocation16_spill]] }
 0x914   : > { %p33_p1 = scmp.ge.s32.totalorder %s36_s0, 6   ;;  %s4062_s22 = sld [smem:[#allocation17_spill]] }
 0x915   : > { %s4063_s23 = sld [smem:[#allocation29_spill]] }
 0x916   : > { %s4064_s24 = sld [smem:[#allocation19_spill]] }
 0x917   : > { %s4065_s25 = sld [smem:[#allocation20_spill]] }
 0x918   : > { %s4066_s26 = sld [smem:[#allocation30_spill]]  ;;  %35 = sbr.rel (!%p33_p1) target bundleno = 29 (0x1d), region = 194 }
 0x919   : > { %s4067_s27 = sld [smem:[#allocation22_spill]] }
 0x91a   : > { %s4068_s28 = sld [smem:[#allocation23_spill]] }
 0x91b   : > { %s4069_s29 = sld [smem:[#allocation27_spill]] }
 0x91c   : > { %s4070_s30 = sld [smem:[#allocation28_spill]] }
 0x91d   :  { %2352 = vsyncpa [#allocation4], 1 }
 0x91e   :  { %2354 = vsyncpa [#allocation4 + $0x1], 1 }
 0x91f   :  { %2355 = vsyncpa [#allocation7], 1 }
 0x920   :  { %2356 = vsyncpa [#allocation10], 1 }
 0x921   :  { %2358 = vsyncpa [#allocation10 + $0x1], 1 }
 0x922   :  { %2359 = vsyncpa [#allocation5], 1 }
 0x923   :  { %2361 = vsyncpa [#allocation5 + $0x1], 1 }

</bundles_post_ra>
